<compile_context>
chip_gen: v7x
topology: tpu7x:2x2x1
jax: 0.10.0
libtpu: 0.0.40
codegen_flags: <defaults>
</compile_context>

<pallas_src>
import jax
import jax.numpy as jnp
from jax.experimental import pallas as pl
from jax.experimental.pallas import tpu as pltpu

EPS = 1e-5
LEAK = 0.02

_VMEM_SPEC = pl.BlockSpec(memory_space=pltpu.MemorySpace.VMEM)
_SMEM_SPEC = pl.BlockSpec(memory_space=pltpu.MemorySpace.SMEM)


# ----------------------------------------------------------------------------
# Generation-aware VMEM budget / scoped limit.
# ----------------------------------------------------------------------------
def _vmem_budget_bytes():
    try:
        cap = getattr(pltpu.get_tpu_info(), "vmem_capacity_bytes", None)
    except Exception:
        cap = None
    if not cap:
        # Conservative default that is safe on every generation (v7x: 64 MiB physical).
        return 48 * 1024 * 1024
    # ~25% headroom for compiler temporaries / double buffering;
    # v5e/v6e (128 MiB) -> ~96-100 MiB, v7x (64 MiB) -> 48 MiB.
    return int(min(cap * 3 // 4, 100 * 1024 * 1024))


# ----------------------------------------------------------------------------
# Path 1: fully fused whole-batch kernel (small / medium B).
# ----------------------------------------------------------------------------
def _fused_kernel(x_ref, w1_ref, g1_ref, be1_ref, w2_ref, g2_ref, be2_ref,
                  w3_ref, g3_ref, be3_ref, w4_ref, b4_ref, o_ref):
    inv_b = 1.0 / x_ref.shape[0]

    def bn_lrelu(h, gamma, beta):
        # Train-mode BatchNorm1d, single pass: sum / sum-of-squares (biased var),
        # mean folded into the shift -> one mul + one add over the (B, F) tile.
        s = jnp.sum(h, axis=0, keepdims=True)
        q = jnp.sum(h * h, axis=0, keepdims=True)
        mean = s * inv_b
        var = jnp.maximum(q * inv_b - mean * mean, 0.0)
        scale = jax.lax.rsqrt(var + EPS) * gamma
        shift = beta - mean * scale
        hn = h * scale + shift
        return jnp.where(hn >= 0.0, hn, LEAK * hn)

    # Layers 1-3: bf16 MXU matmuls (x cast in-kernel) with f32 accumulation;
    # BN / LeakyReLU stay f32.  b1..b3 omitted (cancel in BN mean subtraction).
    h = jnp.dot(x_ref[...].astype(jnp.bfloat16), w1_ref[...],
                preferred_element_type=jnp.float32)
    h = bn_lrelu(h, g1_ref[...], be1_ref[...])
    h = jnp.dot(h.astype(jnp.bfloat16), w2_ref[...],
                preferred_element_type=jnp.float32)
    h = bn_lrelu(h, g2_ref[...], be2_ref[...])
    h = jnp.dot(h.astype(jnp.bfloat16), w3_ref[...],
                preferred_element_type=jnp.float32)
    h = bn_lrelu(h, g3_ref[...], be3_ref[...])

    # Head: produce logits as a lane-dense (1, B) row = w4 @ h^T (contraction on
    # the shared 64-dim axis) instead of a (B, 1) column -> unmasked stores.
    logit = jax.lax.dot_general(
        w4_ref[...], h, (((1,), (1,)), ((), ())),
        preferred_element_type=jnp.float32) + b4_ref[0]
    o_ref[...] = 1.0 / (1.0 + jnp.exp(-logit))


def _fused_forward(x, p, vmem_limit):
    B, in_f = x.shape
    args = (x,
            p["w1_bf16"], p["g1"], p["be1"],
            p["w2_bf16"], p["g2"], p["be2"],
            p["w3_bf16"], p["g3"], p["be3"],
            p["w4_row"], p["b4_vec"])
    in_specs = [_VMEM_SPEC] * 11 + [_SMEM_SPEC]

    flops = 2 * B * (in_f * 512 + 512 * 256 + 256 * 64 + 64)
    bytes_accessed = sum(a.size * a.dtype.itemsize for a in args) + B * 4

    out = pl.pallas_call(
        _fused_kernel,
        out_shape=jax.ShapeDtypeStruct((1, B), jnp.float32),
        in_specs=in_specs,
        out_specs=_VMEM_SPEC,
        compiler_params=pltpu.CompilerParams(vmem_limit_bytes=vmem_limit),
        cost_estimate=pl.CostEstimate(
            flops=flops,
            transcendentals=2 * B + (512 + 256 + 64),
            bytes_accessed=bytes_accessed),
    )(*args)
    return out.reshape(B, 1)


# ----------------------------------------------------------------------------
# Path 2: batch-tiled, two-pass-BatchNorm pipeline (large B / v7x).
# ----------------------------------------------------------------------------
def _matmul_and_stats(a, w_ref, h_ref, s_ref, q_ref):
    h = jnp.dot(a.astype(jnp.bfloat16), w_ref[...],
                preferred_element_type=jnp.float32)
    h_ref[...] = h
    s_ref[0] = jnp.sum(h, axis=0, keepdims=True)       # per-tile partial sum
    q_ref[0] = jnp.sum(h * h, axis=0, keepdims=True)   # per-tile partial sumsq


def _layer_first_kernel(x_ref, w_ref, h_ref, s_ref, q_ref):
    _matmul_and_stats(x_ref[...], w_ref, h_ref, s_ref, q_ref)


def _layer_mid_kernel(h_in_ref, scale_ref, shift_ref, w_ref, h_ref, s_ref, q_ref):
    a = h_in_ref[...] * scale_ref[...] + shift_ref[...]   # previous layer's BN
    a = jnp.where(a >= 0.0, a, LEAK * a)                  # LeakyReLU(0.02)
    _matmul_and_stats(a, w_ref, h_ref, s_ref, q_ref)


def _head_kernel(h_ref, scale_ref, shift_ref, w4_ref, b4_ref, o_ref):
    a = h_ref[...] * scale_ref[...] + shift_ref[...]
    a = jnp.where(a >= 0.0, a, LEAK * a)
    # Lane-dense (1, TILE_B) logit row per tile.
    logit = jax.lax.dot_general(
        w4_ref[...], a, (((1,), (1,)), ((), ())),
        preferred_element_type=jnp.float32) + b4_ref[0]
    o_ref[0] = 1.0 / (1.0 + jnp.exp(-logit))


def _linear_stats_layer(h_in, w_bf16, scale, shift, block_b, vmem_limit):
    """(optional affine+LeakyReLU) -> matmul over batch tiles; also emits per-tile
    partial sum / sum-of-squares of the pre-BN output for the next layer's BN."""
    B, in_f = h_in.shape
    out_f = w_bf16.shape[1]
    nt = B // block_b

    tile_spec = pl.BlockSpec((block_b, in_f), lambda i: (i, 0))
    row_spec = pl.BlockSpec((1, in_f), lambda i: (0, 0))
    w_spec = pl.BlockSpec((in_f, out_f), lambda i: (0, 0))   # VMEM-resident weight

    if scale is None:
        kernel = _layer_first_kernel
        args = (h_in, w_bf16)
        in_specs = [tile_spec, w_spec]
    else:
        kernel = _layer_mid_kernel
        args = (h_in, scale, shift, w_bf16)
        in_specs = [tile_spec, row_spec, row_spec, w_spec]

    out_shape = (jax.ShapeDtypeStruct((B, out_f), jnp.float32),
                 jax.ShapeDtypeStruct((nt, 1, out_f), jnp.float32),
                 jax.ShapeDtypeStruct((nt, 1, out_f), jnp.float32))
    out_specs = (pl.BlockSpec((block_b, out_f), lambda i: (i, 0)),
                 pl.BlockSpec((1, 1, out_f), lambda i: (i, 0, 0)),
                 pl.BlockSpec((1, 1, out_f), lambda i: (i, 0, 0)))

    return pl.pallas_call(
        kernel,
        grid=(nt,),
        in_specs=in_specs,
        out_specs=out_specs,
        out_shape=out_shape,
        compiler_params=pltpu.CompilerParams(
            dimension_semantics=("parallel",),      # megacore on v7x
            vmem_limit_bytes=vmem_limit),
    )(*args)


def _head_layer(h3, scale, shift, w4_row, b4_vec, block_b, vmem_limit):
    B, in_f = h3.shape
    nt = B // block_b
    out = pl.pallas_call(
        _head_kernel,
        grid=(nt,),
        in_specs=[pl.BlockSpec((block_b, in_f), lambda i: (i, 0)),
                  pl.BlockSpec((1, in_f), lambda i: (0, 0)),
                  pl.BlockSpec((1, in_f), lambda i: (0, 0)),
                  pl.BlockSpec((1, in_f), lambda i: (0, 0)),
                  _SMEM_SPEC],
        out_specs=pl.BlockSpec((1, 1, block_b), lambda i: (i, 0, 0)),
        out_shape=jax.ShapeDtypeStruct((nt, 1, block_b), jnp.float32),
        compiler_params=pltpu.CompilerParams(
            dimension_semantics=("parallel",),
            vmem_limit_bytes=vmem_limit),
    )(h3, scale, shift, w4_row, b4_vec)
    return out.reshape(B, 1)


def _finalize_bn(s_partial, q_partial, batch, gamma, beta):
    """Fold global batch stats (from per-tile partials) into (scale, shift)."""
    s = jnp.sum(s_partial, axis=0)          # (1, F)
    q = jnp.sum(q_partial, axis=0)          # (1, F)
    mean = s / batch
    var = jnp.maximum(q / batch - mean * mean, 0.0)
    scale = jax.lax.rsqrt(var + EPS) * gamma
    shift = beta - mean * scale
    return scale, shift


def _tiled_forward(x, p, block_b, vmem_limit):
    B = x.shape[0]
    h1, s1, q1 = _linear_stats_layer(x, p["w1_bf16"], None, None, block_b, vmem_limit)
    sc1, sh1 = _finalize_bn(s1, q1, B, p["g1"], p["be1"])
    h2, s2, q2 = _linear_stats_layer(h1, p["w2_bf16"], sc1, sh1, block_b, vmem_limit)
    sc2, sh2 = _finalize_bn(s2, q2, B, p["g2"], p["be2"])
    h3, s3, q3 = _linear_stats_layer(h2, p["w3_bf16"], sc2, sh2, block_b, vmem_limit)
    sc3, sh3 = _finalize_bn(s3, q3, B, p["g3"], p["be3"])
    return _head_layer(h3, sc3, sh3, p["w4_row"], p["b4_vec"], block_b, vmem_limit)


# ----------------------------------------------------------------------------
# Dispatcher.
# ----------------------------------------------------------------------------
def _fused_vmem_estimate(batch, in_f):
    weight_bytes = ((in_f * 512 + 512 * 256 + 256 * 64) * 2 + 64 * 4
                    + 2 * (512 + 256 + 64) * 4)
    per_row = in_f * 4 + 6 * (512 + 256 + 64) + 4   # f32 acts + bf16 matmul copies
    return 2 * (weight_bytes + batch * per_row)     # 2x for compiler temporaries


def _pick_block_b(batch):
    # v6e/v7x MXU is 2x256x256, v5e is 4x128x128 -> prefer M-tiles that fill it.
    for cand in (512, 256, 128):
        if batch % cand == 0:
            return cand
    best = None
    for cand in range(8, min(batch, 512) + 1, 8):
        if batch % cand == 0:
            best = cand
    return best


def discriminator_forward(x, params, *, block_b=None, force_tiled=False):
    """x: (B, in_feats) f32.  params: output of prepare_params()."""
    B, in_f = x.shape
    vmem_limit = _vmem_budget_bytes()
    fused_fits = _fused_vmem_estimate(B, in_f) <= vmem_limit
    want_tiled = force_tiled or block_b is not None or (not fused_fits) or B >= 2048
    if want_tiled:
        bb = block_b if block_b is not None else _pick_block_b(B)
        if bb is not None and bb % 8 == 0 and B % bb == 0:
            return _tiled_forward(x, params, bb, vmem_limit)
        if not fused_fits:
            raise ValueError(
                f"batch {B} needs the tiled path but cannot be split into "
                f"multiple-of-8 tiles; pad the batch or pass block_b explicitly.")
    return _fused_forward(x, params, vmem_limit)


# ----------------------------------------------------------------------------
# Parameters.
# ----------------------------------------------------------------------------
def init_params(key, in_feats):
    """PyTorch-style init.  Linear weights stored pre-transposed as (in, out)."""
    sizes = [(in_feats, 512), (512, 256), (256, 64), (64, 1)]
    params = {}
    for idx, (fan_in, fan_out) in enumerate(sizes, start=1):
        key, kw, kb = jax.random.split(key, 3)
        bound = 1.0 / jnp.sqrt(float(fan_in))
        params[f"w{idx}"] = jax.random.uniform(
            kw, (fan_in, fan_out), jnp.float32, -bound, bound)
        params[f"b{idx}"] = jax.random.uniform(
            kb, (1, fan_out), jnp.float32, -bound, bound)
        if idx <= 3:  # BatchNorm affine params (perturb gamma so the path is exercised)
            key, kg = jax.random.split(key)
            params[f"g{idx}"] = 1.0 + 0.1 * jax.random.normal(
                kg, (1, fan_out), jnp.float32)
            params[f"be{idx}"] = jnp.zeros((1, fan_out), jnp.float32)
    return params


def prepare_params(params):
    """One-time conversion for the kernels: persistent bf16 weights (cast once at
    load, not per call), w4 as an f32 (1, 64) row, b4 as an SMEM scalar."""
    prepared = {
        "w1_bf16": params["w1"].astype(jnp.bfloat16),
        "w2_bf16": params["w2"].astype(jnp.bfloat16),
        "w3_bf16": params["w3"].astype(jnp.bfloat16),
        "w4_row": jnp.asarray(params["w4"], jnp.float32).reshape(1, -1),
        "b4_vec": jnp.asarray(params["b4"], jnp.float32).reshape(1),
    }
    for i in (1, 2, 3):
        prepared[f"g{i}"] = jnp.asarray(params[f"g{i}"], jnp.float32)
        prepared[f"be{i}"] = jnp.asarray(params[f"be{i}"], jnp.float32)
    return prepared


# ----------------------------------------------------------------------------
# References.
# ----------------------------------------------------------------------------
def _reference_forward_exact(x, params):
    """Pure-f32 reference with exact PyTorch train-mode semantics (incl. b1..b3)."""
    def bn_lrelu(h, g, be):
        m = jnp.mean(h, axis=0, keepdims=True)
        v = jnp.mean((h - m) ** 2, axis=0, keepdims=True)
        hn = (h - m) / jnp.sqrt(v + EPS) * g + be
        return jnp.where(hn >= 0, hn, LEAK * hn)

    h = bn_lrelu(x @ params["w1"] + params["b1"], params["g1"], params["be1"])
    h = bn_lrelu(h @ params["w2"] + params["b2"], params["g2"], params["be2"])
    h = bn_lrelu(h @ params["w3"] + params["b3"], params["g3"], params["be3"])
    return jax.nn.sigmoid(h @ params["w4"] + params["b4"])


def _reference_forward_kernel_math(x, params):
    """Reference matching the kernels' math (bf16 dots, sum/sumsq BN, no b1..b3)."""
    def bn_lrelu(h, g, be):
        n = h.shape[0]
        s = jnp.sum(h, axis=0, keepdims=True)
        q = jnp.sum(h * h, axis=0, keepdims=True)
        mean = s / n
        var = jnp.maximum(q / n - mean * mean, 0.0)
        scale = jax.lax.rsqrt(var + EPS) * g
        shift = be - mean * scale
        hn = h * scale + shift
        return jnp.where(hn >= 0, hn, LEAK * hn)

    h = jnp.dot(x.astype(jnp.bfloat16), params["w1"].astype(jnp.bfloat16),
                preferred_element_type=jnp.float32)
    h = bn_lrelu(h, params["g1"], params["be1"])
    h = jnp.dot(h.astype(jnp.bfloat16), params["w2"].astype(jnp.bfloat16),
                preferred_element_type=jnp.float32)
    h = bn_lrelu(h, params["g2"], params["be2"])
    h = jnp.dot(h.astype(jnp.bfloat16), params["w3"].astype(jnp.bfloat16),
                preferred_element_type=jnp.float32)
    h = bn_lrelu(h, params["g3"], params["be3"])
    logit = h @ params["w4"] + params["b4"]
    return 1.0 / (1.0 + jnp.exp(-logit))


# ----------------------------------------------------------------------------
# Demo.
# ----------------------------------------------------------------------------
if __name__ == "__main__":
    key = jax.random.PRNGKey(0)
    batch, in_feats = 64, 128   # small synthetic shapes (in_feats_size = 128)

    key, kx, kp = jax.random.split(key, 3)
    x = jax.random.normal(kx, (batch, in_feats), jnp.float32)
    params = init_params(kp, in_feats)
    dparams = prepare_params(params)   # one-time bf16 weight cast

    # Path 1: fused whole-batch kernel.
    out_fused = jax.block_until_ready(discriminator_forward(x, dparams))
    assert out_fused.shape == (batch, 1)

    # Path 2: batch-tiled two-pass-BatchNorm pipeline (4 tiles of 16 rows).
    out_tiled = jax.block_until_ready(
        discriminator_forward(x, dparams, block_b=16, force_tiled=True))
    assert out_tiled.shape == (batch, 1)

    ref_match = _reference_forward_kernel_math(x, params)
    ref_exact = _reference_forward_exact(x, params)

    # Tight check against a reference computing the same math as the kernels.
    assert jnp.allclose(out_fused, ref_match, atol=5e-3, rtol=0.0), \
        "fused path mismatch vs kernel-math reference"
    assert jnp.allclose(out_tiled, ref_match, atol=5e-3, rtol=0.0), \
        "tiled path mismatch vs kernel-math reference"

    # Semantics check against the exact f32 PyTorch train-mode forward
    # (tolerance reflects bf16 matmul operands).
    assert jnp.allclose(out_fused, ref_exact, atol=4e-2, rtol=0.0), \
        "fused path mismatch vs exact f32 reference"
    assert jnp.allclose(out_tiled, ref_exact, atol=4e-2, rtol=0.0), \
        "tiled path mismatch vs exact f32 reference"

    print("KERNEL_OK")
</pallas_src>

<mosaic_0001>
module attributes {stable_mosaic.version = 11 : i64} {
  func.func @_fused_kernel(%arg0: memref<64x128xf32, #tpu.memory_space<vmem>>, %arg1: memref<128x512xbf16, #tpu.memory_space<vmem>>, %arg2: memref<1x512xf32, #tpu.memory_space<vmem>>, %arg3: memref<1x512xf32, #tpu.memory_space<vmem>>, %arg4: memref<512x256xbf16, #tpu.memory_space<vmem>>, %arg5: memref<1x256xf32, #tpu.memory_space<vmem>>, %arg6: memref<1x256xf32, #tpu.memory_space<vmem>>, %arg7: memref<256x64xbf16, #tpu.memory_space<vmem>>, %arg8: memref<1x64xf32, #tpu.memory_space<vmem>>, %arg9: memref<1x64xf32, #tpu.memory_space<vmem>>, %arg10: memref<1x64xf32, #tpu.memory_space<vmem>>, %arg11: memref<1xf32, #tpu.memory_space<smem>>, %arg12: memref<1x64xf32, #tpu.memory_space<vmem>>) attributes {dimension_semantics = [], scalar_prefetch = 0 : i64, scratch_operands = 0 : i64, tpu.core_type = #tpu.core_type<tc>} {
    %c0 = arith.constant 0 : index
    %c0_0 = arith.constant 0 : index
    %0 = vector.load %arg0[%c0, %c0_0] : memref<64x128xf32, #tpu.memory_space<vmem>>, vector<64x128xf32>
    %1 = arith.truncf %0 : vector<64x128xf32> to vector<64x128xbf16>
    %c0_1 = arith.constant 0 : index
    %c0_2 = arith.constant 0 : index
    %2 = vector.load %arg1[%c0_1, %c0_2] : memref<128x512xbf16, #tpu.memory_space<vmem>>, vector<128x512xbf16>
    %cst = arith.constant dense<0.000000e+00> : vector<64x512xf32>
    %3 = tpu.matmul %1, %2, %cst {dimension_numbers = #tpu.dot_dimension_numbers<[1], [0], [0], [1], [0, 0, 1, 1], [], []>} : vector<64x128xbf16>, vector<128x512xbf16>, vector<64x512xf32> -> vector<64x512xf32>
    %c0_3 = arith.constant 0 : index
    %c0_4 = arith.constant 0 : index
    %4 = vector.load %arg2[%c0_3, %c0_4] : memref<1x512xf32, #tpu.memory_space<vmem>>, vector<1x512xf32>
    %c0_5 = arith.constant 0 : index
    %c0_6 = arith.constant 0 : index
    %5 = vector.load %arg3[%c0_5, %c0_6] : memref<1x512xf32, #tpu.memory_space<vmem>>, vector<1x512xf32>
    %cst_7 = arith.constant dense<0.000000e+00> : vector<512xf32>
    %6 = vector.multi_reduction <add>, %3, %cst_7 [0] : vector<64x512xf32> to vector<512xf32>
    %7 = vector.shape_cast %6 : vector<512xf32> to vector<1x512xf32>
    %8 = arith.mulf %3, %3 : vector<64x512xf32>
    %cst_8 = arith.constant dense<0.000000e+00> : vector<512xf32>
    %9 = vector.multi_reduction <add>, %8, %cst_8 [0] : vector<64x512xf32> to vector<512xf32>
    %10 = vector.shape_cast %9 : vector<512xf32> to vector<1x512xf32>
    %cst_9 = arith.constant 1.562500e-02 : f32
    %11 = vector.broadcast %cst_9 : f32 to vector<1x512xf32>
    %12 = arith.mulf %7, %11 : vector<1x512xf32>
    %cst_10 = arith.constant 1.562500e-02 : f32
    %13 = vector.broadcast %cst_10 : f32 to vector<1x512xf32>
    %14 = arith.mulf %10, %13 : vector<1x512xf32>
    %15 = arith.mulf %12, %12 : vector<1x512xf32>
    %16 = arith.subf %14, %15 : vector<1x512xf32>
    %cst_11 = arith.constant 0.000000e+00 : f32
    %17 = vector.broadcast %cst_11 : f32 to vector<1x512xf32>
    %18 = arith.maximumf %16, %17 : vector<1x512xf32>
    %cst_12 = arith.constant 9.99999974E-6 : f32
    %19 = vector.broadcast %cst_12 : f32 to vector<1x512xf32>
    %20 = arith.addf %18, %19 : vector<1x512xf32>
    %21 = math.rsqrt %20 : vector<1x512xf32>
    %22 = arith.mulf %21, %4 : vector<1x512xf32>
    %23 = arith.mulf %12, %22 : vector<1x512xf32>
    %24 = arith.subf %5, %23 : vector<1x512xf32>
    %25 = vector.broadcast %22 : vector<1x512xf32> to vector<64x512xf32>
    %26 = arith.mulf %3, %25 : vector<64x512xf32>
    %27 = vector.broadcast %24 : vector<1x512xf32> to vector<64x512xf32>
    %28 = arith.addf %26, %27 : vector<64x512xf32>
    %cst_13 = arith.constant 0.000000e+00 : f32
    %29 = vector.broadcast %cst_13 : f32 to vector<64x512xf32>
    %30 = arith.cmpf oge, %28, %29 : vector<64x512xf32>
    %cst_14 = arith.constant 2.000000e-02 : f32
    %31 = vector.broadcast %cst_14 : f32 to vector<64x512xf32>
    %32 = arith.mulf %31, %28 : vector<64x512xf32>
    %33 = arith.select %30, %28, %32 : vector<64x512xi1>, vector<64x512xf32>
    %34 = arith.truncf %33 : vector<64x512xf32> to vector<64x512xbf16>
    %c0_15 = arith.constant 0 : index
    %c0_16 = arith.constant 0 : index
    %35 = vector.load %arg4[%c0_15, %c0_16] : memref<512x256xbf16, #tpu.memory_space<vmem>>, vector<512x256xbf16>
    %cst_17 = arith.constant dense<0.000000e+00> : vector<64x256xf32>
    %36 = tpu.matmul %34, %35, %cst_17 {dimension_numbers = #tpu.dot_dimension_numbers<[1], [0], [0], [1], [0, 0, 1, 1], [], []>} : vector<64x512xbf16>, vector<512x256xbf16>, vector<64x256xf32> -> vector<64x256xf32>
    %c0_18 = arith.constant 0 : index
    %c0_19 = arith.constant 0 : index
    %37 = vector.load %arg5[%c0_18, %c0_19] : memref<1x256xf32, #tpu.memory_space<vmem>>, vector<1x256xf32>
    %c0_20 = arith.constant 0 : index
    %c0_21 = arith.constant 0 : index
    %38 = vector.load %arg6[%c0_20, %c0_21] : memref<1x256xf32, #tpu.memory_space<vmem>>, vector<1x256xf32>
    %cst_22 = arith.constant dense<0.000000e+00> : vector<256xf32>
    %39 = vector.multi_reduction <add>, %36, %cst_22 [0] : vector<64x256xf32> to vector<256xf32>
    %40 = vector.shape_cast %39 : vector<256xf32> to vector<1x256xf32>
    %41 = arith.mulf %36, %36 : vector<64x256xf32>
    %cst_23 = arith.constant dense<0.000000e+00> : vector<256xf32>
    %42 = vector.multi_reduction <add>, %41, %cst_23 [0] : vector<64x256xf32> to vector<256xf32>
    %43 = vector.shape_cast %42 : vector<256xf32> to vector<1x256xf32>
    %cst_24 = arith.constant 1.562500e-02 : f32
    %44 = vector.broadcast %cst_24 : f32 to vector<1x256xf32>
    %45 = arith.mulf %40, %44 : vector<1x256xf32>
    %cst_25 = arith.constant 1.562500e-02 : f32
    %46 = vector.broadcast %cst_25 : f32 to vector<1x256xf32>
    %47 = arith.mulf %43, %46 : vector<1x256xf32>
    %48 = arith.mulf %45, %45 : vector<1x256xf32>
    %49 = arith.subf %47, %48 : vector<1x256xf32>
    %cst_26 = arith.constant 0.000000e+00 : f32
    %50 = vector.broadcast %cst_26 : f32 to vector<1x256xf32>
    %51 = arith.maximumf %49, %50 : vector<1x256xf32>
    %cst_27 = arith.constant 9.99999974E-6 : f32
    %52 = vector.broadcast %cst_27 : f32 to vector<1x256xf32>
    %53 = arith.addf %51, %52 : vector<1x256xf32>
    %54 = math.rsqrt %53 : vector<1x256xf32>
    %55 = arith.mulf %54, %37 : vector<1x256xf32>
    %56 = arith.mulf %45, %55 : vector<1x256xf32>
    %57 = arith.subf %38, %56 : vector<1x256xf32>
    %58 = vector.broadcast %55 : vector<1x256xf32> to vector<64x256xf32>
    %59 = arith.mulf %36, %58 : vector<64x256xf32>
    %60 = vector.broadcast %57 : vector<1x256xf32> to vector<64x256xf32>
    %61 = arith.addf %59, %60 : vector<64x256xf32>
    %cst_28 = arith.constant 0.000000e+00 : f32
    %62 = vector.broadcast %cst_28 : f32 to vector<64x256xf32>
    %63 = arith.cmpf oge, %61, %62 : vector<64x256xf32>
    %cst_29 = arith.constant 2.000000e-02 : f32
    %64 = vector.broadcast %cst_29 : f32 to vector<64x256xf32>
    %65 = arith.mulf %64, %61 : vector<64x256xf32>
    %66 = arith.select %63, %61, %65 : vector<64x256xi1>, vector<64x256xf32>
    %67 = arith.truncf %66 : vector<64x256xf32> to vector<64x256xbf16>
    %c0_30 = arith.constant 0 : index
    %c0_31 = arith.constant 0 : index
    %68 = vector.load %arg7[%c0_30, %c0_31] : memref<256x64xbf16, #tpu.memory_space<vmem>>, vector<256x64xbf16>
    %cst_32 = arith.constant dense<0.000000e+00> : vector<64x64xf32>
    %69 = tpu.matmul %67, %68, %cst_32 {dimension_numbers = #tpu.dot_dimension_numbers<[1], [0], [0], [1], [0, 0, 1, 1], [], []>} : vector<64x256xbf16>, vector<256x64xbf16>, vector<64x64xf32> -> vector<64x64xf32>
    %c0_33 = arith.constant 0 : index
    %c0_34 = arith.constant 0 : index
    %70 = vector.load %arg8[%c0_33, %c0_34] : memref<1x64xf32, #tpu.memory_space<vmem>>, vector<1x64xf32>
    %c0_35 = arith.constant 0 : index
    %c0_36 = arith.constant 0 : index
    %71 = vector.load %arg9[%c0_35, %c0_36] : memref<1x64xf32, #tpu.memory_space<vmem>>, vector<1x64xf32>
    %cst_37 = arith.constant dense<0.000000e+00> : vector<64xf32>
    %72 = vector.multi_reduction <add>, %69, %cst_37 [0] : vector<64x64xf32> to vector<64xf32>
    %73 = vector.shape_cast %72 : vector<64xf32> to vector<1x64xf32>
    %74 = arith.mulf %69, %69 : vector<64x64xf32>
    %cst_38 = arith.constant dense<0.000000e+00> : vector<64xf32>
    %75 = vector.multi_reduction <add>, %74, %cst_38 [0] : vector<64x64xf32> to vector<64xf32>
    %76 = vector.shape_cast %75 : vector<64xf32> to vector<1x64xf32>
    %cst_39 = arith.constant 1.562500e-02 : f32
    %77 = vector.broadcast %cst_39 : f32 to vector<1x64xf32>
    %78 = arith.mulf %73, %77 : vector<1x64xf32>
    %cst_40 = arith.constant 1.562500e-02 : f32
    %79 = vector.broadcast %cst_40 : f32 to vector<1x64xf32>
    %80 = arith.mulf %76, %79 : vector<1x64xf32>
    %81 = arith.mulf %78, %78 : vector<1x64xf32>
    %82 = arith.subf %80, %81 : vector<1x64xf32>
    %cst_41 = arith.constant 0.000000e+00 : f32
    %83 = vector.broadcast %cst_41 : f32 to vector<1x64xf32>
    %84 = arith.maximumf %82, %83 : vector<1x64xf32>
    %cst_42 = arith.constant 9.99999974E-6 : f32
    %85 = vector.broadcast %cst_42 : f32 to vector<1x64xf32>
    %86 = arith.addf %84, %85 : vector<1x64xf32>
    %87 = math.rsqrt %86 : vector<1x64xf32>
    %88 = arith.mulf %87, %70 : vector<1x64xf32>
    %89 = arith.mulf %78, %88 : vector<1x64xf32>
    %90 = arith.subf %71, %89 : vector<1x64xf32>
    %91 = vector.broadcast %88 : vector<1x64xf32> to vector<64x64xf32>
    %92 = arith.mulf %69, %91 : vector<64x64xf32>
    %93 = vector.broadcast %90 : vector<1x64xf32> to vector<64x64xf32>
    %94 = arith.addf %92, %93 : vector<64x64xf32>
    %cst_43 = arith.constant 0.000000e+00 : f32
    %95 = vector.broadcast %cst_43 : f32 to vector<64x64xf32>
    %96 = arith.cmpf oge, %94, %95 : vector<64x64xf32>
    %cst_44 = arith.constant 2.000000e-02 : f32
    %97 = vector.broadcast %cst_44 : f32 to vector<64x64xf32>
    %98 = arith.mulf %97, %94 : vector<64x64xf32>
    %99 = arith.select %96, %94, %98 : vector<64x64xi1>, vector<64x64xf32>
    %c0_45 = arith.constant 0 : index
    %c0_46 = arith.constant 0 : index
    %100 = vector.load %arg10[%c0_45, %c0_46] : memref<1x64xf32, #tpu.memory_space<vmem>>, vector<1x64xf32>
    %cst_47 = arith.constant dense<0.000000e+00> : vector<1x64xf32>
    %101 = tpu.matmul %100, %99, %cst_47 {dimension_numbers = #tpu.dot_dimension_numbers<[1], [1], [0], [0], [0, 0, 1, 0], [], []>} : vector<1x64xf32>, vector<64x64xf32>, vector<1x64xf32> -> vector<1x64xf32>
    %c0_48 = arith.constant 0 : index
    %102 = memref.load %arg11[%c0_48] : memref<1xf32, #tpu.memory_space<smem>>
    %103 = vector.broadcast %102 : f32 to vector<1x64xf32>
    %104 = arith.addf %101, %103 : vector<1x64xf32>
    %cst_49 = arith.constant 0.000000e+00 : f32
    %105 = vector.broadcast %cst_49 : f32 to vector<1x64xf32>
    %106 = arith.subf %105, %104 : vector<1x64xf32>
    %107 = math.exp %106 : vector<1x64xf32>
    %cst_50 = arith.constant 1.000000e+00 : f32
    %108 = vector.broadcast %cst_50 : f32 to vector<1x64xf32>
    %109 = arith.addf %108, %107 : vector<1x64xf32>
    %cst_51 = arith.constant 1.000000e+00 : f32
    %110 = vector.broadcast %cst_51 : f32 to vector<1x64xf32>
    %111 = arith.divf %110, %109 : vector<1x64xf32>
    %c0_52 = arith.constant 0 : index
    %c0_53 = arith.constant 0 : index
    %112 = vector.load %arg12[%c0_52, %c0_53] : memref<1x64xf32, #tpu.memory_space<vmem>>, vector<1x64xf32>
    tpu.vector_store %arg12[%c0_52, %c0_53], %111 {strides = array<i32>} : memref<1x64xf32, #tpu.memory_space<vmem>>, vector<1x64xf32>,
    return
  }
}

</mosaic_0001>

<bundles_post_ra>
// kernel: tpu_custom_call.1
= control target key start
LH: loop header
LB: loop body
LE: loop exit
PB: predicated region body
PF: predicated region fallthrough
CT: control target
= control target key end

     0   :  { %18 = vsyncpa [#allocation4], 0  ;;  %s3335_s0 = inlined_call_operand.vmem [shape: f32[64,128], index: 0, kind: input, shape index: {}]   ;;  %s3336_s1 = inlined_call_operand.hbm [shape: bf16[128,512], index: 1, kind: input, shape index: {}]   ;;  %s3337_s2 = inlined_call_operand.vmem [shape: f32[1,512], index: 2, kind: input, shape index: {}]   ;;  %s3338_s3 = inlined_call_operand.vmem [shape: f32[1,512], index: 3, kind: input, shape index: {}]   ;;  %s3339_s4 = inlined_call_operand.hbm [shape: bf16[512,256], index: 4, kind: input, shape index: {}]   ;;  %s3340_s5 = inlined_call_operand.vmem [shape: f32[1,256], index: 5, kind: input, shape index: {}]   ;;  %s3341_s6 = inlined_call_operand.vmem [shape: f32[1,256], index: 6, kind: input, shape index: {}]   ;;  %s3342_s7 = inlined_call_operand.vmem [shape: bf16[256,64], index: 7, kind: input, shape index: {}]   ;;  %s3343_s8 = inlined_call_operand.vmem [shape: f32[1,64], index: 8, kind: input, shape index: {}]   ;;  %s3344_s9 = inlined_call_operand.vmem [shape: f32[1,64], index: 9, kind: input, shape index: {}]   ;;  %s3345_s10 = inlined_call_operand.vmem [shape: f32[1,64], index: 10, kind: input, shape index: {}]   ;;  %s3346_s11 = inlined_call_operand.<no memory space> [shape: f32[1], index: 11, kind: input, shape index: {}]   ;;  %s3347_s12 = inlined_call_operand.hbm [shape: f32[1,64], index: 12, kind: output, shape index: {}]  }
   0x1   :  { %19 = vsyncpa [#allocation7], 0 }
   0x2   :  { %20 = vsyncpa [#allocation5], 0  ;;  %s2528_s21 = smov [#allocation3]   ;;  %s2456_s25 = scalar_lea.hbm %s3336_s1, 4096 }
   0x3   :  { %s28_s22 = sshll.u32 %s2528_s21, 4  ;;  %p2457_p0 = scmp.ne.s32.totalorder %s3336_s1, %s2456_s25  ;;  %s29_s22 = int_to_ptr.vmem [resolvable:$true] %s28_s22 }
   0x4   :  { %p2460_p1 = scmp.lt.u32.totalorder %s2456_s25, %s3336_s1 }
   0x6   :  { %p2462_p2 = pnand %p2460_p1, %p2457_p0 }
   0x8   :  { %2465 = shalt.err (!%p2462_p2)
}
   0x9   :  { %s2466_s30 = scalar_lea.vmem %s29_s22, 4096  ;;  %p2471_p4 = scmp.lt.s32.totalorder %s29_s22, %s29_s22 }
   0xa   :  { %p2467_p3 = scmp.ne.s32.totalorder %s29_s22, %s2466_s30  ;;  %p2472_p5 = scmp.lt.s32.totalorder %s2466_s30, %s2466_s30 }
   0xc   :  { %p2473_p6 = por %p2472_p5, %p2471_p4 }
   0xe   :  { %p2474_p7 = pnand %p2473_p6, %p2467_p3 }
  0x10   :  { %2477 = shalt.err (!%p2474_p7)
}
  0x11   :  { %s2529_s13 = smov 256   ;;  %s2530_s14 = smov 16  }
  0x12   :  { %34 = dma.hbm_to_vmem [thread:$0]  %s3336_s1, 4096, %s29_s22, [#allocation4], %s2529_s13, %s2529_s13, %s2530_s14  }
  0x13   :  { %s2531_s17 = smov [#allocation6]   ;;  %s2478_s21 = scalar_lea.hbm %s3339_s4, 8192 }
  0x14   :  { %s44_s18 = sshll.u32 %s2531_s17, 4  ;;  %p2479_p8 = scmp.ne.s32.totalorder %s3339_s4, %s2478_s21  ;;  %s45_s18 = int_to_ptr.vmem [resolvable:$true] %s44_s18 }
  0x15   :  { %p2482_p9 = scmp.lt.u32.totalorder %s2478_s21, %s3339_s4 }
  0x17   :  { %p2484_p10 = pnand %p2482_p9, %p2479_p8 }
  0x19   :  { %2487 = shalt.err (!%p2484_p10)
}
  0x1a   :  { %s2488_s27 = scalar_lea.vmem %s45_s18, 8192  ;;  %p2493_p12 = scmp.lt.s32.totalorder %s45_s18, %s45_s18 }
  0x1b   :  { %p2489_p11 = scmp.ne.s32.totalorder %s45_s18, %s2488_s27  ;;  %p2494_p13 = scmp.lt.s32.totalorder %s2488_s27, %s2488_s27 }
  0x1d   :  { %p2495_p0 = por %p2494_p13, %p2493_p12 }
  0x1f   :  { %p2496_p1 = pnand %p2495_p0, %p2489_p11 }
  0x21   :  { %2499 = shalt.err (!%p2496_p1)
}
  0x22   :  { %s2532_s1 = smov 128   ;;  %s2533_s22 = smov 8  }
  0x23   :  { %50 = dma.hbm_to_vmem [thread:$0]  %s3339_s4, 8192, %s45_s18, [#allocation7], %s2532_s1, %s2532_s1, %s2533_s22  }
  0x24   :  { %2522 = dma.done.wait [#allocation4], 4096  }
  0x25   :  { %2523 = vsyncadd [#allocation4], 4294963200 }
  0x26   :  { %2524 = dma.done.wait [#allocation7], 8192  }
  0x27   :  { %2525 = vsyncadd [#allocation7], 4294959104  ;;  %v2534_v0 = vmov 0   ;;  %v2278_v1 = vld [vmem:[#allocation3 + $0x4] ss:$16 sps:$4 sm:$0xff]   ;;  %v73_v18 = vld [vmem:[%s3335_s0 + $0x8] sm:$0xff] }
  0x28   :  { %308 = vmatprep.mubr.bf16.mxu1 %v2534_v0  ;;  %v2280_v2 = vld [vmem:[#allocation3] ss:$16 sps:$4 sm:$0xff]   ;;  %276 = vmatprep.subr.bf16.mxu1 %v2278_v1  ;;  %v2281_v3 = vld [vmem:[#allocation3 + $0x24] ss:$16 sps:$4 sm:$0xff]   ;;  %v2304_v19 = vld [vmem:[#allocation3 + $0xc] ss:$16 sps:$4 sm:$0xff]  }
  0x29   :  { %277 = vmatpush1.bf16.msra.mxu1 %v2280_v2  ;;  %v2283_v4 = vld [vmem:[#allocation3 + $0x20] ss:$16 sps:$4 sm:$0xff]   ;;  %v2284_v5 = vld [vmem:[#allocation3 + $0x44] ss:$16 sps:$4 sm:$0xff]   ;;  %v2302_v20 = vld [vmem:[#allocation3 + $0x8] ss:$16 sps:$4 sm:$0xff]  }
  0x2a   :  { %278 = vmatprep.subr.bf16.mxu1 %v2281_v3  ;;  %v2286_v6 = vld [vmem:[#allocation3 + $0x40] ss:$16 sps:$4 sm:$0xff]   ;;  %v2287_v7 = vld [vmem:[#allocation3 + $0x64] ss:$16 sps:$4 sm:$0xff]   ;;  %v2307_v22 = vld [vmem:[#allocation3 + $0x2c] ss:$16 sps:$4 sm:$0xff]  }
  0x2b   :  { %v2289_v8 = vld [vmem:[#allocation3 + $0x60] ss:$16 sps:$4 sm:$0xff]   ;;  %v2290_v9 = vld [vmem:[#allocation3 + $0x84] ss:$16 sps:$4 sm:$0xff]   ;;  %v2305_v23 = vld [vmem:[#allocation3 + $0x28] ss:$16 sps:$4 sm:$0xff]  }
  0x2c   :  { %v2292_v10 = vld [vmem:[#allocation3 + $0x80] ss:$16 sps:$4 sm:$0xff]   ;;  %v2293_v11 = vld [vmem:[#allocation3 + $0xa4] ss:$16 sps:$4 sm:$0xff]   ;;  %v75_v25 = vld [vmem:[%s3335_s0 + $0x18] sm:$0xff]  ;;  %s2539_s25 = smov [#allocation8]  }
  0x2d   :  { %279 = vmatpush1.bf16.msra.mxu1 %v2283_v4  ;;  %v2295_v12 = vld [vmem:[#allocation3 + $0xa0] ss:$16 sps:$4 sm:$0xff]   ;;  %v2296_v13 = vld [vmem:[#allocation3 + $0xc4] ss:$16 sps:$4 sm:$0xff]   ;;  %v2310_v26 = vld [vmem:[#allocation3 + $0x4c] ss:$16 sps:$4 sm:$0xff]  }
  0x2e   :  { %280 = vmatprep.subr.bf16.mxu1 %v2284_v5  ;;  %v2298_v14 = vld [vmem:[#allocation3 + $0xc0] ss:$16 sps:$4 sm:$0xff]   ;;  %v2299_v15 = vld [vmem:[#allocation3 + $0xe4] ss:$16 sps:$4 sm:$0xff]   ;;  %v2308_v27 = vld [vmem:[#allocation3 + $0x48] ss:$16 sps:$4 sm:$0xff]  }
  0x2f   :  { %v2301_v16 = vld [vmem:[#allocation3 + $0xe0] ss:$16 sps:$4 sm:$0xff]   ;;  %v2313_v29 = vld [vmem:[#allocation3 + $0x6c] ss:$16 sps:$4 sm:$0xff]   ;;  %v2311_v30 = vld [vmem:[#allocation3 + $0x68] ss:$16 sps:$4 sm:$0xff]  }
  0x30   :  { %v72_v17 = vld [vmem:[%s3335_s0] sm:$0xff]  ;;  %v74_v24 = vld [vmem:[%s3335_s0 + $0x10] sm:$0xff]  ;;  %v77_v32 = vld [vmem:[%s3335_s0 + $0x28] sm:$0xff]  ;;  %s2035_s26 = sshll.u32 %s2539_s25, 4  ;;  %s2036_s26 = int_to_ptr.vmem [resolvable:$true] %s2035_s26 }
  0x31   :  { %281 = vmatpush1.bf16.msra.mxu1 %v2286_v6  ;;  %v80_v21 = vpack.c.bf16 %v73_v18, %v72_v17  ;;  %v81_v28 = vpack.c.bf16 %v75_v25, %v74_v24  ;;  %v76_v31 = vld [vmem:[%s3335_s0 + $0x20] sm:$0xff]  ;;  %v2316_v33 = vld [vmem:[#allocation3 + $0x8c] ss:$16 sps:$4 sm:$0xff]   ;;  %v2314_v34 = vld [vmem:[#allocation3 + $0x88] ss:$16 sps:$4 sm:$0xff]   ;;  %s2504_s27 = scalar_lea.vmem %s2036_s26, 32  ;;  %p2505_p3 = scmp.lt.s32.totalorder %s2036_s26, %s2036_s26 }
  0x32   :  { %282 = vmatprep.subr.bf16.mxu1 %v2287_v7  ;;  %v82_v35 = vpack.c.bf16 %v77_v32, %v76_v31  ;;  %v2319_v36 = vld [vmem:[#allocation3 + $0xac] ss:$16 sps:$4 sm:$0xff]   ;;  %v2317_v37 = vld [vmem:[#allocation3 + $0xa8] ss:$16 sps:$4 sm:$0xff]   ;;  %v78_v38 = vld [vmem:[%s3335_s0 + $0x30] sm:$0xff] }
  0x33   :  { %v79_v39 = vld [vmem:[%s3335_s0 + $0x38] sm:$0xff]  ;;  %v2326_v45 = vld [vmem:[#allocation6 + $0x4] ss:$8 sps:$4 sm:$0xff]   ;;  %v2328_v46 = vld [vmem:[#allocation6] ss:$8 sps:$4 sm:$0xff]  }
  0x34   :  { %v2322_v40 = vld [vmem:[#allocation3 + $0xcc] ss:$16 sps:$4 sm:$0xff]   ;;  %v2320_v41 = vld [vmem:[#allocation3 + $0xc8] ss:$16 sps:$4 sm:$0xff]   ;;  %v83_v42 = vpack.c.bf16 %v79_v39, %v78_v38  ;;  %1244 = vmatprep.subr.bf16.mxu0 %v2326_v45 }
  0x35   :  { %283 = vmatpush1.bf16.msra.mxu1 %v2289_v8  ;;  %v2325_v43 = vld [vmem:[#allocation3 + $0xec] ss:$16 sps:$4 sm:$0xff]   ;;  %v2323_v44 = vld [vmem:[#allocation3 + $0xe8] ss:$16 sps:$4 sm:$0xff]   ;;  %1245 = vmatpush1.bf16.msra.mxu0 %v2328_v46 }
  0x36   :  { %284 = vmatprep.subr.bf16.mxu1 %v2290_v9  ;;  %v2329_v47 = vld [vmem:[#allocation6 + $0x14] ss:$8 sps:$4 sm:$0xff]   ;;  %v2331_v48 = vld [vmem:[#allocation6 + $0x10] ss:$8 sps:$4 sm:$0xff]   ;;  %v2332_v49 = vld [vmem:[#allocation6 + $0x24] ss:$8 sps:$4 sm:$0xff]  }
  0x37   :  { %1246 = vmatprep.subr.bf16.mxu0 %v2329_v47  ;;  %v2334_v50 = vld [vmem:[#allocation6 + $0x20] ss:$8 sps:$4 sm:$0xff]   ;;  %v2335_v51 = vld [vmem:[#allocation6 + $0x34] ss:$8 sps:$4 sm:$0xff]   ;;  %v2337_v52 = vld [vmem:[#allocation6 + $0x30] ss:$8 sps:$4 sm:$0xff]  }
  0x38   :  { %v2338_v53 = vld [vmem:[#allocation6 + $0x44] ss:$8 sps:$4 sm:$0xff]   ;;  %v2340_v54 = vld [vmem:[#allocation6 + $0x40] ss:$8 sps:$4 sm:$0xff]   ;;  %v2341_v55 = vld [vmem:[#allocation6 + $0x54] ss:$8 sps:$4 sm:$0xff]  }
  0x39   :  { %285 = vmatpush1.bf16.msra.mxu1 %v2292_v10  ;;  %1247 = vmatpush1.bf16.msra.mxu0 %v2331_v48  ;;  %v2343_v56 = vld [vmem:[#allocation6 + $0x50] ss:$8 sps:$4 sm:$0xff]   ;;  %v2344_v57 = vld [vmem:[#allocation6 + $0x64] ss:$8 sps:$4 sm:$0xff]   ;;  %v2346_v58 = vld [vmem:[#allocation6 + $0x60] ss:$8 sps:$4 sm:$0xff]  }
  0x3a   :  { %286 = vmatprep.subr.bf16.mxu1 %v2293_v11  ;;  %1248 = vmatprep.subr.bf16.mxu0 %v2332_v49  ;;  %v2347_v59 = vld [vmem:[#allocation6 + $0x74] ss:$8 sps:$4 sm:$0xff]   ;;  %v2349_v60 = vld [vmem:[#allocation6 + $0x70] ss:$8 sps:$4 sm:$0xff]   ;;  %v2350_v61 = vld [vmem:[#allocation6 + $0x84] ss:$8 sps:$4 sm:$0xff]  }
  0x3b   :  { %v2352_v62 = vld [vmem:[#allocation6 + $0x80] ss:$8 sps:$4 sm:$0xff]   ;;  %v2353_v63 = vld [vmem:[#allocation6 + $0x94] ss:$8 sps:$4 sm:$0xff]   ;;  %v2356_v1 = vld [vmem:[#allocation6 + $0xa4] ss:$8 sps:$4 sm:$0xff]  }
  0x3c   :  { %v2358_v2 = vld [vmem:[#allocation6 + $0xa0] ss:$8 sps:$4 sm:$0xff]   ;;  %v2359_v3 = vld [vmem:[#allocation6 + $0xb4] ss:$8 sps:$4 sm:$0xff]   ;;  %v2361_v4 = vld [vmem:[#allocation6 + $0xb0] ss:$8 sps:$4 sm:$0xff]  }
  0x3d   :  { %287 = vmatpush1.bf16.msra.mxu1 %v2295_v12  ;;  %1249 = vmatpush1.bf16.msra.mxu0 %v2334_v50  ;;  %v2362_v5 = vld [vmem:[#allocation6 + $0xc4] ss:$8 sps:$4 sm:$0xff]   ;;  %v2364_v6 = vld [vmem:[#allocation6 + $0xc0] ss:$8 sps:$4 sm:$0xff]   ;;  %v2365_v7 = vld [vmem:[#allocation6 + $0xd4] ss:$8 sps:$4 sm:$0xff]  }
  0x3e   :  { %288 = vmatprep.subr.bf16.mxu1 %v2296_v13  ;;  %1250 = vmatprep.subr.bf16.mxu0 %v2335_v51  ;;  %v2367_v8 = vld [vmem:[#allocation6 + $0xd0] ss:$8 sps:$4 sm:$0xff]   ;;  %v2368_v9 = vld [vmem:[#allocation6 + $0xe4] ss:$8 sps:$4 sm:$0xff]   ;;  %v2370_v10 = vld [vmem:[#allocation6 + $0xe0] ss:$8 sps:$4 sm:$0xff]  }
  0x3f   :  { %v2371_v11 = vld [vmem:[#allocation6 + $0xf4] ss:$8 sps:$4 sm:$0xff]   ;;  %v2373_v12 = vld [vmem:[#allocation6 + $0xf0] ss:$8 sps:$4 sm:$0xff]   ;;  %v2376_v13 = vld [vmem:[#allocation6 + $0x104] ss:$8 sps:$4 sm:$0xff]  }
  0x41   :  { %289 = vmatpush1.bf16.msra.mxu1 %v2298_v14  ;;  %1251 = vmatpush1.bf16.msra.mxu0 %v2337_v52 }
  0x42   :  { %290 = vmatprep.subr.bf16.mxu1 %v2299_v15  ;;  %1252 = vmatprep.subr.bf16.mxu0 %v2338_v53 }
  0x45   :  { %291 = vmatpush1.bf16.msra.mxu1 %v2301_v16  ;;  %1253 = vmatpush1.bf16.msra.mxu0 %v2340_v54 }
  0x46   :  { %349 = vmatprep.subr.bf16.mxu1 %v2304_v19  ;;  %1254 = vmatprep.subr.bf16.mxu0 %v2341_v55 }
  0x48   :  { %309 = vmatmul.mubr.bf16.vlgmr.msra.gmra.mrb[0].mxu1 %v80_v21 }
  0x49   :  { %350 = vmatpush1.bf16.msra.mxu1 %v2302_v20  ;;  %318 = vmatprep.mubr.bf16.mxu1 %v2534_v0 }
  0x4a   :  { %351 = vmatprep.subr.bf16.mxu1 %v2307_v22  ;;  %1255 = vmatpush1.bf16.msra.mxu0 %v2343_v56 }
  0x4b   :  { %1256 = vmatprep.subr.bf16.mxu0 %v2344_v57 }
  0x4d   :  { %352 = vmatpush1.bf16.msra.mxu1 %v2305_v23 }
  0x4e   :  { %353 = vmatprep.subr.bf16.mxu1 %v2310_v26  ;;  %1257 = vmatpush1.bf16.msra.mxu0 %v2346_v58 }
  0x4f   :  { %1258 = vmatprep.subr.bf16.mxu0 %v2347_v59 }
  0x50   :  { %319 = vmatmul.mubr.bf16.gmra.mrb[4].mxu1 %v81_v28 }
  0x51   :  { %354 = vmatpush1.bf16.msra.mxu1 %v2308_v27  ;;  %328 = vmatprep.mubr.bf16.mxu1 %v2534_v0 }
  0x52   :  { %355 = vmatprep.subr.bf16.mxu1 %v2313_v29  ;;  %1259 = vmatpush1.bf16.msra.mxu0 %v2349_v60 }
  0x53   :  { %1260 = vmatprep.subr.bf16.mxu0 %v2350_v61 }
  0x55   :  { %356 = vmatpush1.bf16.msra.mxu1 %v2311_v30 }
  0x56   :  { %357 = vmatprep.subr.bf16.mxu1 %v2316_v33  ;;  %1261 = vmatpush1.bf16.msra.mxu0 %v2352_v62 }
  0x57   :  { %1262 = vmatprep.subr.bf16.mxu0 %v2353_v63 }
  0x58   :  { %329 = vmatmul.mubr.bf16.gmra.mrb[8].mxu1 %v82_v35 }
  0x59   :  { %358 = vmatpush1.bf16.msra.mxu1 %v2314_v34  ;;  %338 = vmatprep.mubr.bf16.mxu1 %v2534_v0 }
  0x5a   :  { %359 = vmatprep.subr.bf16.mxu1 %v2319_v36 }
  0x5d   :  { %360 = vmatpush1.bf16.msra.mxu1 %v2317_v37 }
  0x5e   :  { %361 = vmatprep.subr.bf16.mxu1 %v2322_v40 }
  0x60   :  { %339 = vmatmul.mubr.bf16.gmra.mrb[12].mxu1 %v83_v42 }
  0x61   :  { %362 = vmatpush1.bf16.msra.mxu1 %v2320_v41  ;;  %381 = vmatprep.mubr.bf16.mxu1 %v2534_v0 }
  0x62   :  { %363 = vmatprep.subr.bf16.mxu1 %v2325_v43 }
  0x65   :  { %364 = vmatpush1.bf16.msra.mxu1 %v2323_v44 }
  0x68   :  { %382 = vmatmul.mubr.bf16.vlgmr.msra.gmra.mrb[16].mxu1 %v80_v21 }
  0x69   :  { %391 = vmatprep.mubr.bf16.mxu1 %v2534_v0 }
  0x70   :  { %392 = vmatmul.mubr.bf16.gmra.mrb[20].mxu1 %v81_v28 }
  0x71   :  { %401 = vmatprep.mubr.bf16.mxu1 %v2534_v0 }
  0x78   :  { %402 = vmatmul.mubr.bf16.gmra.mrb[24].mxu1 %v82_v35 }
  0x79   :  { %411 = vmatprep.mubr.bf16.mxu1 %v2534_v0  ;;  %v2355_v0 = vld [vmem:[#allocation6 + $0x90] ss:$8 sps:$4 sm:$0xff]  }
  0x7a   :  { %1263 = vmatpush1.bf16.msra.mxu0 %v2355_v0 }
  0x7b   :  { %1264 = vmatprep.subr.bf16.mxu0 %v2356_v1 }
  0x7e   :  { %1265 = vmatpush1.bf16.msra.mxu0 %v2358_v2 }
  0x7f   :  { %1266 = vmatprep.subr.bf16.mxu0 %v2359_v3 }
  0x80   :  { %412 = vmatmul.mubr.bf16.gmra.mrb[28].mxu1 %v83_v42 }
  0x82   :  { %1267 = vmatpush1.bf16.msra.mxu0 %v2361_v4 }
  0x83   :  { %1268 = vmatprep.subr.bf16.mxu0 %v2362_v5 }
  0x86   :  { %1269 = vmatpush1.bf16.msra.mxu0 %v2364_v6 }
  0x87   :  { %1270 = vmatprep.subr.bf16.mxu0 %v2365_v7 }
  0x8a   :  { %1271 = vmatpush1.bf16.msra.mxu0 %v2367_v8 }
  0x8b   :  { %1272 = vmatprep.subr.bf16.mxu0 %v2368_v9 }
  0x8e   :  { %1273 = vmatpush1.bf16.msra.mxu0 %v2370_v10 }
  0x8f   :  { %1274 = vmatprep.subr.bf16.mxu0 %v2371_v11 }
  0x92   :  { %1275 = vmatpush1.bf16.msra.mxu0 %v2373_v12 }
  0x93   :  { %1317 = vmatprep.subr.bf16.mxu0 %v2376_v13 }
 0x11b   :  { %v2661_v14 = vpop.f32.mrb[0].mxu1 }
 0x11c   :  { %v2663_v15 = vpop.f32.mrb[1].mxu1  ;;  %v476_v17 = vmul.f32 %v2661_v14, %v2661_v14 }
 0x11d   :  { %v2665_v16 = vpop.f32.mrb[2].mxu1  ;;  %v477_v21 = vmul.f32 %v2663_v15, %v2663_v15 }
 0x11e   :  { %v424_v18 = vadd.f32 %v2665_v16, %v2661_v14  ;;  %v480_v19 = vmul.f32 %v2665_v16, %v2665_v16  ;;  %v2673_v20 = vpop.f32.mrb[3].mxu1 }
 0x11f   :  { %v437_v22 = vadd.f32 %v2673_v20, %v2663_v15  ;;  %v481_v23 = vmul.f32 %v2673_v20, %v2673_v20 }
 0x120   :  { %v508_v24 = vadd.f32 %v480_v19, %v476_v17 }
 0x121   :  { %v521_v25 = vadd.f32 %v481_v23, %v477_v21 }
 0x123   :  { %v2681_v26 = vpop.f32.mrb[4].mxu1 }
 0x124   :  { %v425_v27 = vadd.f32 %v424_v18, %v2681_v26  ;;  %v484_v28 = vmul.f32 %v2681_v26, %v2681_v26  ;;  %v2686_v29 = vpop.f32.mrb[5].mxu1 }
 0x125   :  { %v438_v30 = vadd.f32 %v437_v22, %v2686_v29  ;;  %v485_v31 = vmul.f32 %v2686_v29, %v2686_v29  ;;  %v2691_v32 = vpop.f32.mrb[6].mxu1 }
 0x126   :  { %v509_v33 = vadd.f32 %v508_v24, %v484_v28  ;;  %v426_v34 = vadd.f32 %v425_v27, %v2691_v32  ;;  %v488_v35 = vmul.f32 %v2691_v32, %v2691_v32  ;;  %v2696_v36 = vpop.f32.mrb[7].mxu1 }
 0x127   :  { %v522_v37 = vadd.f32 %v521_v25, %v485_v31  ;;  %v439_v38 = vadd.f32 %v438_v30, %v2696_v36  ;;  %v489_v39 = vmul.f32 %v2696_v36, %v2696_v36 }
 0x128   :  { %v510_v40 = vadd.f32 %v509_v33, %v488_v35 }
 0x129   :  { %v523_v41 = vadd.f32 %v522_v37, %v489_v39 }
 0x12b   :  { %v2701_v42 = vpop.f32.mrb[8].mxu1 }
 0x12c   :  { %v427_v43 = vadd.f32 %v426_v34, %v2701_v42  ;;  %v492_v44 = vmul.f32 %v2701_v42, %v2701_v42  ;;  %v2706_v45 = vpop.f32.mrb[9].mxu1 }
 0x12d   :  { %v440_v46 = vadd.f32 %v439_v38, %v2706_v45  ;;  %v493_v47 = vmul.f32 %v2706_v45, %v2706_v45  ;;  %v2711_v48 = vpop.f32.mrb[10].mxu1 }
 0x12e   :  { %v511_v49 = vadd.f32 %v510_v40, %v492_v44  ;;  %v428_v50 = vadd.f32 %v427_v43, %v2711_v48  ;;  %v496_v51 = vmul.f32 %v2711_v48, %v2711_v48  ;;  %v2716_v52 = vpop.f32.mrb[11].mxu1 }
 0x12f   :  { %v524_v53 = vadd.f32 %v523_v41, %v493_v47  ;;  %v441_v54 = vadd.f32 %v440_v46, %v2716_v52  ;;  %v497_v55 = vmul.f32 %v2716_v52, %v2716_v52 }
 0x130   :  { %v512_v56 = vadd.f32 %v511_v49, %v496_v51 }
 0x131   :  { %v525_v57 = vadd.f32 %v524_v53, %v497_v55 }
 0x133   :  { %v2721_v58 = vpop.f32.mrb[12].mxu1 }
 0x134   :  { %v429_v59 = vadd.f32 %v428_v50, %v2721_v58  ;;  %v500_v60 = vmul.f32 %v2721_v58, %v2721_v58  ;;  %v2726_v61 = vpop.f32.mrb[13].mxu1 }
 0x135   :  { %v442_v62 = vadd.f32 %v441_v54, %v2726_v61  ;;  %v501_v63 = vmul.f32 %v2726_v61, %v2726_v61  ;;  %v2731_v0 = vpop.f32.mrb[14].mxu1 }
 0x136   :  { %v513_v1 = vadd.f32 %v512_v56, %v500_v60  ;;  %v430_v2 = vadd.f32 %v429_v59, %v2731_v0  ;;  %v504_v3 = vmul.f32 %v2731_v0, %v2731_v0  ;;  %v2736_v4 = vpop.f32.mrb[15].mxu1 }
 0x137   :  { %v526_v5 = vadd.f32 %v525_v57, %v501_v63  ;;  %v443_v6 = vadd.f32 %v442_v62, %v2736_v4  ;;  %v505_v7 = vmul.f32 %v2736_v4, %v2736_v4 }
 0x138   :  { %v431_v8 = vrot.slane %v430_v2, 4  ;;  %v514_v9 = vadd.f32 %v513_v1, %v504_v3 }
 0x139   :  { %v444_v10 = vrot.slane %v443_v6, 4  ;;  %v527_v11 = vadd.f32 %v526_v5, %v505_v7 }
 0x13a   :  { %v432_v12 = vadd.f32 %v431_v8, %v430_v2  ;;  %v515_v13 = vrot.slane %v514_v9, 4 }
 0x13b   :  { %v445_v17 = vadd.f32 %v444_v10, %v443_v6  ;;  %v528_v18 = vrot.slane %v527_v11, 4  ;;  %v2741_v19 = vpop.f32.mrb[16].mxu1 }
 0x13c   :  { %v433_v21 = vrot.slane %v432_v12, 2  ;;  %v516_v22 = vadd.f32 %v515_v13, %v514_v9  ;;  %v2743_v23 = vpop.f32.mrb[17].mxu1  ;;  %v478_v27 = vmul.f32 %v2741_v19, %v2741_v19 }
 0x13d   :  { %v446_v24 = vrot.slane %v445_v17, 2  ;;  %v529_v25 = vadd.f32 %v528_v18, %v527_v11  ;;  %v479_v28 = vmul.f32 %v2743_v23, %v2743_v23  ;;  %v2749_v30 = vpop.f32.mrb[18].mxu1 }
 0x13e   :  { %v434_v31 = vadd.f32 %v433_v21, %v432_v12  ;;  %v517_v33 = vrot.slane %v516_v22, 2  ;;  %v450_v34 = vadd.f32 %v2749_v30, %v2741_v19  ;;  %v482_v35 = vmul.f32 %v2749_v30, %v2749_v30  ;;  %v2755_v37 = vpop.f32.mrb[19].mxu1 }
 0x13f   :  { %v447_v38 = vadd.f32 %v446_v24, %v445_v17  ;;  %v530_v39 = vrot.slane %v529_v25, 2  ;;  %v463_v40 = vadd.f32 %v2755_v37, %v2743_v23  ;;  %v483_v41 = vmul.f32 %v2755_v37, %v2755_v37 }
 0x140   :  { %v435_v43 = vrot.slane %v434_v31, 1  ;;  %v518_v44 = vadd.f32 %v517_v33, %v516_v22  ;;  %v534_v46 = vadd.f32 %v482_v35, %v478_v27 }
 0x141   :  { %v448_v47 = vrot.slane %v447_v38, 1  ;;  %v531_v49 = vadd.f32 %v530_v39, %v529_v25  ;;  %v547_v50 = vadd.f32 %v483_v41, %v479_v28  ;;  %v589_v25 = vlaneseq }
 0x142   :  { %v436_v51 = vadd.f32 %v435_v43, %v434_v31  ;;  %v519_v53 = vrot.slane %v518_v44, 1 }
 0x143   :  { %v449_v54 = vadd.f32 %v448_v47, %v447_v38  ;;  %v532_v55 = vrot.slane %v531_v49, 1  ;;  %v2761_v56 = vpop.f32.mrb[20].mxu1  ;;  %v2796_v43 = vshrl.u32 %v589_v25, 7 }
 0x144   :  { %v520_v57 = vadd.f32 %v519_v53, %v518_v44  ;;  %v2763_v59 = vmul.f32 0.015625, %v436_v51  ;;  %v451_v60 = vadd.f32 %v450_v34, %v2761_v56  ;;  %v486_v62 = vmul.f32 %v2761_v56, %v2761_v56  ;;  %v2768_v63 = vpop.f32.mrb[21].mxu1 }
 0x145   :  { %v533_v1 = vadd.f32 %v532_v55, %v531_v49  ;;  %v2770_v2 = vmul.f32 0.015625, %v449_v54  ;;  %v464_v3 = vadd.f32 %v463_v40, %v2768_v63  ;;  %v487_v5 = vmul.f32 %v2768_v63, %v2768_v63  ;;  %v2775_v6 = vpop.f32.mrb[22].mxu1 }
 0x146   :  { %v564_v7 = vmul.f32 0.015625, %v520_v57  ;;  %v568_v8 = vmul.f32 %v2763_v59, %v2763_v59  ;;  %v535_v9 = vadd.f32 %v534_v46, %v486_v62  ;;  %v452_v10 = vadd.f32 %v451_v60, %v2775_v6  ;;  %v2780_v11 = vpop.f32.mrb[23].mxu1 }
 0x147   :  { %v565_v12 = vmul.f32 0.015625, %v533_v1  ;;  %v569_v13 = vmul.f32 %v2770_v2, %v2770_v2  ;;  %v548_v17 = vadd.f32 %v547_v50, %v487_v5  ;;  %v490_v18 = vmul.f32 %v2775_v6, %v2775_v6  ;;  %v2817_v5 = vld [vmem:[%s3337_s2] sm:$0xf] }
 0x148   :  { %v572_v21 = vsub.f32 %v564_v7, %v568_v8  ;;  %v465_v22 = vadd.f32 %v464_v3, %v2780_v11  ;;  %v491_v24 = vmul.f32 %v2780_v11, %v2780_v11  ;;  %v2812_v1 = vsub.s32 0, %v2796_v43 }
 0x149   :  { %v573_v27 = vsub.f32 %v565_v12, %v569_v13  ;;  %v536_v28 = vadd.f32 %v535_v9, %v490_v18  ;;  %v2820_v7 = vsub.s32 1, %v2796_v43 }
 0x14a   :  { %v576_v31 = vmax.f32 %v572_v21, 0.0  ;;  %v549_v33 = vadd.f32 %v548_v17, %v491_v24  ;;  %v592_v13 = vrot.slane %v2817_v5, %v2812_v1 }
 0x14b   :  { %v577_v34 = vmax.f32 %v573_v27, 0.0  ;;  %v2789_v35 = vpop.f32.mrb[24].mxu1 }
 0x14c   :  { %v580_v38 = vadd.f32 1e-05, %v576_v31  ;;  %v453_v39 = vadd.f32 %v452_v10, %v2789_v35  ;;  %v494_v40 = vmul.f32 %v2789_v35, %v2789_v35  ;;  %v2794_v41 = vpop.f32.mrb[25].mxu1 }
 0x14d   :  { %v581_v44 = vadd.f32 1e-05, %v577_v34  ;;  %v466_v46 = vadd.f32 %v465_v22, %v2794_v41  ;;  %v495_v47 = vmul.f32 %v2794_v41, %v2794_v41  ;;  %v2801_v49 = vpop.f32.mrb[26].mxu1  ;;  %v596_v22 = vrot.slane %v2817_v5, %v2820_v7 }
 0x14e   :  { %2438 = vrsqrt.f32 %v580_v38  ;;  %v537_v50 = vadd.f32 %v536_v28, %v494_v40  ;;  %v454_v51 = vadd.f32 %v453_v39, %v2801_v49  ;;  %v498_v53 = vmul.f32 %v2801_v49, %v2801_v49  ;;  %v2806_v54 = vpop.f32.mrb[27].mxu1 }
 0x14f   :  { %2440 = vrsqrt.f32 %v581_v44  ;;  %v550_v55 = vadd.f32 %v549_v33, %v495_v47  ;;  %v467_v57 = vadd.f32 %v466_v46, %v2806_v54  ;;  %v499_v60 = vmul.f32 %v2806_v54, %v2806_v54 }
 0x150   :  { %v538_v62 = vadd.f32 %v537_v50, %v498_v53 }
 0x151   :  { %v551_v3 = vadd.f32 %v550_v55, %v499_v60 }
 0x153   :  { %v2822_v8 = vpop.f32.mrb[28].mxu1 }
 0x154   :  { %v455_v9 = vadd.f32 %v454_v51, %v2822_v8  ;;  %v502_v10 = vmul.f32 %v2822_v8, %v2822_v8  ;;  %v2827_v12 = vpop.f32.mrb[29].mxu1 }
 0x155   :  { %v468_v17 = vadd.f32 %v467_v57, %v2827_v12  ;;  %v503_v18 = vmul.f32 %v2827_v12, %v2827_v12  ;;  %v2834_v21 = vpop.f32.mrb[30].mxu1 }
 0x156   :  { %v539_v24 = vadd.f32 %v538_v62, %v502_v10  ;;  %v456_v25 = vadd.f32 %v455_v9, %v2834_v21  ;;  %v506_v27 = vmul.f32 %v2834_v21, %v2834_v21  ;;  %v2841_v28 = vpop.f32.mrb[31].mxu1 }
 0x157   :  { %v552_v31 = vadd.f32 %v551_v3, %v503_v18  ;;  %v469_v33 = vadd.f32 %v468_v17, %v2841_v28  ;;  %v507_v34 = vmul.f32 %v2841_v28, %v2841_v28 }
 0x158   :  { %v2439_v38 = vpop.eup %2438  ;;  %v457_v39 = vrot.slane %v456_v25, 4  ;;  %v540_v40 = vadd.f32 %v539_v24, %v506_v27 }
 0x159   :  { %v2441_v44 = vpop.eup %2440  ;;  %v609_v46 = vmul.f32 %v2439_v38, %v592_v13  ;;  %v470_v47 = vrot.slane %v469_v33, 4  ;;  %v553_v50 = vadd.f32 %v552_v31, %v507_v34 }
 0x15a   :  { %v610_v51 = vmul.f32 %v2441_v44, %v596_v22  ;;  %v458_v53 = vadd.f32 %v457_v39, %v456_v25  ;;  %v541_v55 = vrot.slane %v540_v40, 4 }
 0x15b   :  { %v2847_v57 = vmul.f32 %v609_v46, %v2763_v59  ;;  %v650_v60 = vrot.slane %v609_v46, %v2812_v1  ;;  %v471_v62 = vadd.f32 %v470_v47, %v469_v33  ;;  %v554_v3 = vrot.slane %v553_v50, 4 }
 0x15c   :  { %v2851_v9 = vmul.f32 %v610_v51, %v2770_v2  ;;  %v654_v10 = vrot.slane %v610_v51, %v2812_v1  ;;  %v459_v17 = vrot.slane %v458_v53, 2  ;;  %v542_v18 = vadd.f32 %v541_v55, %v540_v40 }
 0x15d   :  { %v2855_v13 = vmul.f32 %v650_v60, %v2731_v0  ;;  %v472_v22 = vrot.slane %v471_v62, 2  ;;  %v555_v24 = vadd.f32 %v554_v3, %v553_v50  ;;  %v2858_v25 = vmul.f32 %v650_v60, %v2661_v14 }
 0x15e   :  { %v621_v59 = vcombine.low %v2847_v57, %v2851_v9  ;;  %v2863_v27 = vmul.f32 %v654_v10, %v2736_v4  ;;  %v460_v2 = vadd.f32 %v459_v17, %v458_v53  ;;  %v543_v31 = vrot.slane %v542_v18, 2 }
 0x15f   :  { %v473_v33 = vadd.f32 %v472_v22, %v471_v62  ;;  %v556_v34 = vrot.slane %v555_v24, 2  ;;  %v2866_v38 = vmul.f32 %v654_v10, %v2663_v15  ;;  %v2869_v0 = vmul.f32 %v654_v10, %v2673_v20 }
 0x160   :  { %v461_v39 = vrot.slane %v460_v2, 1  ;;  %v544_v40 = vadd.f32 %v543_v31, %v542_v18  ;;  %v2872_v14 = vmul.f32 %v650_v60, %v2665_v16  ;;  %v2875_v4 = vmul.f32 %v654_v10, %v2686_v29 }
 0x161   :  { %v474_v44 = vrot.slane %v473_v33, 1  ;;  %v557_v46 = vadd.f32 %v556_v34, %v555_v24  ;;  %v2878_v47 = vmul.f32 %v654_v10, %v2696_v36  ;;  %v2881_v15 = vmul.f32 %v650_v60, %v2681_v26 }
 0x162   :  { %v462_v50 = vadd.f32 %v461_v39, %v460_v2  ;;  %v545_v51 = vrot.slane %v544_v40, 1  ;;  %v2884_v20 = vmul.f32 %v650_v60, %v2691_v32  ;;  %v2887_v16 = vmul.f32 %v654_v10, %v2706_v45 }
 0x163   :  { %v475_v53 = vadd.f32 %v474_v44, %v473_v33  ;;  %v558_v55 = vrot.slane %v557_v46, 1  ;;  %v2890_v57 = vmul.f32 %v654_v10, %v2716_v52  ;;  %v2893_v36 = vmul.f32 %v650_v60, %v2701_v42 }
 0x164   :  { %v546_v29 = vadd.f32 %v545_v51, %v544_v40  ;;  %v562_v62 = vmul.f32 0.015625, %v462_v50  ;;  %v2896_v3 = vmul.f32 %v650_v60, %v2711_v48  ;;  %v2899_v32 = vmul.f32 %v654_v10, %v2726_v61 }
 0x165   :  { %v559_v26 = vadd.f32 %v558_v55, %v557_v46  ;;  %v563_v9 = vmul.f32 0.015625, %v475_v53  ;;  %v2902_v17 = vmul.f32 %v650_v60, %v2721_v58  ;;  %v2535_v48 = vmov 1966171168  }
 0x166   :  { %v566_v45 = vmul.f32 0.015625, %v546_v29  ;;  %v570_v18 = vmul.f32 %v562_v62, %v562_v62  ;;  %v624_v39 = vunpack.c.l.s4 %v2535_v48  ;;  %v599_v61 = vsub.s32 2, %v2796_v43 }
 0x167   :  { %v567_v52 = vmul.f32 0.015625, %v559_v26  ;;  %v571_v22 = vmul.f32 %v563_v9, %v563_v9  ;;  %v603_v10 = vsub.s32 3, %v2796_v43 }
 0x168   :  { %v574_v24 = vsub.f32 %v566_v45, %v570_v18  ;;  %v625_v58 = vunpack.c.0.s8 %v624_v39  ;;  %v600_v60 = vrot.slane %v2817_v5, %v599_v61 }
 0x169   :  { %v575_v2 = vsub.f32 %v567_v52, %v571_v22  ;;  %v604_v40 = vrot.slane %v2817_v5, %v603_v10 }
 0x16a   :  { %v578_v31 = vmax.f32 %v574_v24, 0.0  ;;  %v2909_v46 = vsub.s32 %v625_v58, %v2796_v43 }
 0x16b   :  { %v579_v42 = vmax.f32 %v575_v2, 0.0 }
 0x16c   :  { %v582_v33 = vadd.f32 1e-05, %v578_v31  ;;  %v629_v26 = vrot.slane %v621_v59, %v2909_v46 }
 0x16d   :  { %v583_v34 = vadd.f32 1e-05, %v579_v42 }
 0x16e   :  { %2442 = vrsqrt.f32 %v582_v33 }
 0x16f   :  { %2444 = vrsqrt.f32 %v583_v34 }
 0x178   :  { %v2443_v44 = vpop.eup %2442 }
 0x179   :  { %v2445_v50 = vpop.eup %2444  ;;  %v611_v51 = vmul.f32 %v2443_v44, %v600_v60 }
 0x17a   :  { %v612_v53 = vmul.f32 %v2445_v50, %v604_v40 }
 0x17b   :  { %v615_v55 = vmul.f32 %v611_v51, %v562_v62  ;;  %v658_v29 = vrot.slane %v611_v51, %v2812_v1 }
 0x17c   :  { %v616_v45 = vmul.f32 %v612_v53, %v563_v9  ;;  %v662_v18 = vrot.slane %v612_v53, %v2812_v1 }
 0x17d   :  { %v2915_v52 = vmul.f32 %v658_v29, %v2834_v21  ;;  %v2918_v5 = vmul.f32 %v658_v29, %v2741_v19  ;;  %v2921_v43 = vmul.f32 %v658_v29, %v2749_v30  ;;  %v2924_v22 = vmul.f32 %v658_v29, %v2761_v56 }
 0x17e   :  { %v622_v62 = vcombine.low %v615_v55, %v616_v45  ;;  %v694_v24 = vmul.f32 %v662_v18, %v2841_v28  ;;  %v2928_v59 = vmul.f32 %v662_v18, %v2743_v23  ;;  %v2931_v9 = vmul.f32 %v662_v18, %v2755_v37 }
 0x17f   :  { %v2934_v21 = vmul.f32 %v662_v18, %v2768_v63  ;;  %v2937_v19 = vmul.f32 %v662_v18, %v2780_v11  ;;  %v2940_v30 = vmul.f32 %v658_v29, %v2775_v6  ;;  %v2943_v56 = vmul.f32 %v662_v18, %v2794_v41  ;;  %v423_v41 = vld [vmem:[%s3338_s3] sm:$0xf] }
 0x180   :  { %v636_v28 = vrot.slane %v622_v62, %v2909_v46  ;;  %v2947_v23 = vmul.f32 %v662_v18, %v2806_v54  ;;  %v2950_v37 = vmul.f32 %v658_v29, %v2789_v35  ;;  %v2953_v63 = vmul.f32 %v658_v29, %v2801_v49 }
 0x181   :  { %v2956_v11 = vmul.f32 %v662_v18, %v2827_v12  ;;  %v2959_v6 = vmul.f32 %v658_v29, %v2822_v8 }
 0x182   :  { %v637_v2 = vcombine.low %v629_v26, %v636_v28 }
 0x184   :  { %v644_v54 = vrot.slane %v637_v2, %v2909_v46 }
 0x186   :  { %v646_v31 = vsub.f32 %v423_v41, %v644_v54  ;;  %v2377_v41 = vld [vmem:[#allocation6 + $0x110] ss:$8 sps:$4 sm:$0xff]  }
 0x188   :  { %v2966_v35 = vrot.slane %v646_v31, %v2812_v1  ;;  %v2969_v49 = vrot.slane %v646_v31, %v2820_v7  ;;  %v2971_v42 = vrot.slane %v646_v31, %v603_v10  ;;  %v2973_v12 = vrot.slane %v646_v31, %v599_v61  ;;  %v2382_v31 = vld [vmem:[#allocation6 + $0x124] ss:$8 sps:$4 sm:$0xff]  }
 0x18a   :  { %v2976_v8 = vadd.f32 %v2971_v42, %v694_v24  ;;  %v717_v33 = vadd.f32 %v2969_v49, %v2866_v38  ;;  %v721_v34 = vadd.f32 %v2969_v49, %v2869_v0  ;;  %v716_v48 = vadd.f32 %v2966_v35, %v2858_v25 }
 0x18b   :  { %v720_v39 = vadd.f32 %v2966_v35, %v2872_v14  ;;  %v725_v10 = vadd.f32 %v2969_v49, %v2875_v4  ;;  %v729_v61 = vadd.f32 %v2969_v49, %v2878_v47  ;;  %v724_v58 = vadd.f32 %v2966_v35, %v2881_v15  ;;  %v2374_v4 = vld [vmem:[#allocation6 + $0x100] ss:$8 sps:$4 sm:$0xff]   ;;  %v2379_v15 = vld [vmem:[#allocation6 + $0x114] ss:$8 sps:$4 sm:$0xff]  }
 0x18c   :  { %vm749_vm0 = vcmp.ge.f32.partialorder %v717_v33, 0.0  ;;  %vm753_vm1 = vcmp.ge.f32.partialorder %v721_v34, 0.0  ;;  %v781_v38 = vmul.f32 0.02, %v717_v33  ;;  %v785_v60 = vmul.f32 0.02, %v721_v34 }
 0x18d   :  { %vm748_vm2 = vcmp.ge.f32.partialorder %v716_v48, 0.0  ;;  %vm752_vm3 = vcmp.ge.f32.partialorder %v720_v39, 0.0  ;;  %v780_v0 = vmul.f32 0.02, %v716_v48  ;;  %v784_v25 = vmul.f32 0.02, %v720_v39 }
 0x18e   :  { %v813_v40 = vsel %vm749_vm0, %v717_v33, %v781_v38  ;;  %v817_v44 = vsel %vm753_vm1, %v721_v34, %v785_v60  ;;  %vm757_vm4 = vcmp.ge.f32.partialorder %v725_v10, 0.0  ;;  %vm761_vm5 = vcmp.ge.f32.partialorder %v729_v61, 0.0  ;;  %v2380_v38 = vld [vmem:[#allocation6 + $0x120] ss:$8 sps:$4 sm:$0xff]  }
 0x18f   :  { %v845_v14 = vpack.c.bf16 %v817_v44, %v813_v40  ;;  %v812_v50 = vsel %vm748_vm2, %v716_v48, %v780_v0  ;;  %v816_v51 = vsel %vm752_vm3, %v720_v39, %v784_v25  ;;  %v789_v47 = vmul.f32 0.02, %v725_v10 }
 0x190   :  { %v844_v53 = vpack.c.bf16 %v816_v51, %v812_v50  ;;  %v793_v55 = vmul.f32 0.02, %v729_v61  ;;  %v728_v29 = vadd.f32 %v2966_v35, %v2884_v20  ;;  %vm756_vm6 = vcmp.ge.f32.partialorder %v724_v58, 0.0 }
 0x191   :  { %1276 = vmatprep.mubr.bf16.mxu0 %v845_v14  ;;  %v821_v26 = vsel %vm757_vm4, %v725_v10, %v789_v47  ;;  %v788_v45 = vmul.f32 0.02, %v724_v58  ;;  %v733_v18 = vadd.f32 %v2969_v49, %v2887_v16  ;;  %v737_v62 = vadd.f32 %v2969_v49, %v2890_v57 }
 0x192   :  { %1277 = vmatmul.mubr.bf16.vlgmr.msra.gmra.mrb[0].mxu0 %v844_v53  ;;  %v825_v24 = vsel %vm761_vm5, %v729_v61, %v793_v55  ;;  %vm760_vm7 = vcmp.ge.f32.partialorder %v728_v29, 0.0  ;;  %v792_v28 = vmul.f32 0.02, %v728_v29  ;;  %v732_v2 = vadd.f32 %v2966_v35, %v2893_v36 }
 0x193   :  { %1318 = vmatpush1.bf16.msra.mxu0 %v2374_v4  ;;  %v849_v20 = vpack.c.bf16 %v825_v24, %v821_v26  ;;  %v820_v54 = vsel %vm756_vm6, %v724_v58, %v788_v45  ;;  %vm765_vm8 = vcmp.ge.f32.partialorder %v733_v18, 0.0  ;;  %vm769_vm9 = vcmp.ge.f32.partialorder %v737_v62, 0.0 }
 0x194   :  { %1319 = vmatprep.subr.bf16.mxu0 %v2379_v15  ;;  %v824_v16 = vsel %vm760_vm7, %v728_v29, %v792_v28  ;;  %v797_v33 = vmul.f32 0.02, %v733_v18  ;;  %v801_v34 = vmul.f32 0.02, %v737_v62  ;;  %v736_v57 = vadd.f32 %v2966_v35, %v2896_v3  ;;  %v2385_v3 = vld [vmem:[#allocation6 + $0x134] ss:$8 sps:$4 sm:$0xff]  }
 0x195   :  { %1286 = vmatprep.mubr.bf16.mxu0 %v849_v20  ;;  %v848_v48 = vpack.c.bf16 %v824_v16, %v820_v54  ;;  %vm764_vm10 = vcmp.ge.f32.partialorder %v732_v2, 0.0  ;;  %v796_v39 = vmul.f32 0.02, %v732_v2  ;;  %v741_v36 = vadd.f32 %v2969_v49, %v2899_v32  ;;  %v2386_v28 = vld [vmem:[#allocation6 + $0x140] ss:$8 sps:$4 sm:$0xff]  }
 0x196   :  { %v829_v10 = vsel %vm765_vm8, %v733_v18, %v797_v33  ;;  %v833_v61 = vsel %vm769_vm9, %v737_v62, %v801_v34  ;;  %vm768_vm11 = vcmp.ge.f32.partialorder %v736_v57, 0.0  ;;  %v800_v58 = vmul.f32 0.02, %v736_v57 }
 0x197   :  { %1320 = vmatpush1.bf16.msra.mxu0 %v2377_v41  ;;  %v853_v60 = vpack.c.bf16 %v833_v61, %v829_v10  ;;  %v828_v0 = vsel %vm764_vm10, %v732_v2, %v796_v39  ;;  %v745_v25 = vadd.f32 %v2969_v49, %v2863_v27  ;;  %vm773_vm12 = vcmp.ge.f32.partialorder %v741_v36, 0.0  ;;  %v2383_v49 = vld [vmem:[#allocation6 + $0x130] ss:$8 sps:$4 sm:$0xff]   ;;  %v2391_v41 = vld [vmem:[#allocation6 + $0x154] ss:$8 sps:$4 sm:$0xff]  }
 0x198   :  { %1321 = vmatprep.subr.bf16.mxu0 %v2382_v31  ;;  %v832_v40 = vsel %vm768_vm11, %v736_v57, %v800_v58  ;;  %v805_v44 = vmul.f32 0.02, %v741_v36  ;;  %v740_v14 = vadd.f32 %v2966_v35, %v2902_v17  ;;  %v744_v32 = vadd.f32 %v2966_v35, %v2855_v13  ;;  %v2388_v13 = vld [vmem:[#allocation6 + $0x144] ss:$8 sps:$4 sm:$0xff]  }
 0x199   :  { %v852_v4 = vpack.c.bf16 %v832_v40, %v828_v0  ;;  %vm777_vm13 = vcmp.ge.f32.partialorder %v745_v25, 0.0  ;;  %v809_v50 = vmul.f32 0.02, %v745_v25  ;;  %v719_v51 = vadd.f32 %v2971_v42, %v2928_v59  ;;  %v2394_v10 = vld [vmem:[#allocation6 + $0x164] ss:$8 sps:$4 sm:$0xff]  }
 0x19a   :  { %1287 = vmatmul.mubr.bf16.gmra.mrb[4].mxu0 %v848_v48  ;;  %v837_v47 = vsel %vm773_vm12, %v741_v36, %v805_v44  ;;  %vm772_vm14 = vcmp.ge.f32.partialorder %v740_v14, 0.0  ;;  %vm776_vm15 = vcmp.ge.f32.partialorder %v744_v32, 0.0  ;;  %v804_v27 = vmul.f32 0.02, %v740_v14  ;;  %v2392_v40 = vld [vmem:[#allocation6 + $0x160] ss:$8 sps:$4 sm:$0xff]  }
 0x19b   :  { %1322 = vmatpush1.bf16.msra.mxu0 %v2380_v38  ;;  %1296 = vmatprep.mubr.bf16.mxu0 %v853_v60  ;;  %v841_v53 = vsel %vm777_vm13, %v745_v25, %v809_v50  ;;  %v808_v55 = vmul.f32 0.02, %v744_v32  ;;  %v723_v17 = vadd.f32 %v2971_v42, %v2931_v9  ;;  %vm751_vm0 = vcmp.ge.f32.partialorder %v719_v51, 0.0 }
 0x19c   :  { %1323 = vmatprep.subr.bf16.mxu0 %v2385_v3  ;;  %v857_v35 = vpack.c.bf16 %v841_v53, %v837_v47  ;;  %v3015_v15 = vsel %vm772_vm14, %v740_v14, %v804_v27  ;;  %v783_v59 = vmul.f32 0.02, %v719_v51  ;;  %v718_v29 = vadd.f32 %v2973_v12, %v2918_v5  ;;  %v2397_v14 = vld [vmem:[#allocation6 + $0x174] ss:$8 sps:$4 sm:$0xff]  }
 0x19d   :  { %v3019_v26 = vsel %vm776_vm15, %v744_v32, %v808_v55  ;;  %vm755_vm1 = vcmp.ge.f32.partialorder %v723_v17, 0.0  ;;  %v787_v45 = vmul.f32 0.02, %v723_v17  ;;  %v722_v18 = vadd.f32 %v2973_v12, %v2921_v43 }
 0x19e   :  { %v856_v9 = vpack.c.bf16 %v3019_v26, %v3015_v15  ;;  %v3025_v62 = vsel %vm751_vm0, %v719_v51, %v783_v59  ;;  %vm750_vm2 = vcmp.ge.f32.partialorder %v718_v29, 0.0  ;;  %v782_v24 = vmul.f32 0.02, %v718_v29 }
 0x19f   :  { %1324 = vmatpush1.bf16.msra.mxu0 %v2383_v49  ;;  %v819_v2 = vsel %vm755_vm1, %v723_v17, %v787_v45  ;;  %vm754_vm3 = vcmp.ge.f32.partialorder %v722_v18, 0.0  ;;  %v786_v20 = vmul.f32 0.02, %v722_v18  ;;  %v727_v5 = vadd.f32 %v2971_v42, %v2934_v21  ;;  %v2389_v21 = vld [vmem:[#allocation6 + $0x150] ss:$8 sps:$4 sm:$0xff]  }
 0x1a0   :  { %1325 = vmatprep.subr.bf16.mxu0 %v2388_v13  ;;  %v847_v54 = vpack.c.bf16 %v819_v2, %v3025_v62  ;;  %v3030_v43 = vsel %vm750_vm2, %v718_v29, %v782_v24  ;;  %v731_v31 = vadd.f32 %v2971_v42, %v2937_v19  ;;  %v726_v16 = vadd.f32 %v2973_v12, %v2924_v22  ;;  %v2395_v17 = vld [vmem:[#allocation6 + $0x170] ss:$8 sps:$4 sm:$0xff]   ;;  %v2398_v45 = vld [vmem:[#allocation6 + $0x180] ss:$8 sps:$4 sm:$0xff]   ;;  %v2406_v24 = vld [vmem:[#allocation6 + $0x1a4] ss:$8 sps:$4 sm:$0xff]  }
 0x1a1   :  { %v3036_v33 = vsel %vm754_vm3, %v722_v18, %v786_v20  ;;  %vm759_vm4 = vcmp.ge.f32.partialorder %v727_v5, 0.0  ;;  %v791_v34 = vmul.f32 0.02, %v727_v5  ;;  %v730_v57 = vadd.f32 %v2973_v12, %v2940_v30  ;;  %v2412_v2 = vld [vmem:[#allocation6 + $0x1c4] ss:$8 sps:$4 sm:$0xff]  }
 0x1a2   :  { %1297 = vmatmul.mubr.bf16.gmra.mrb[8].mxu0 %v852_v4  ;;  %v846_v48 = vpack.c.bf16 %v3036_v33, %v3030_v43  ;;  %vm763_vm5 = vcmp.ge.f32.partialorder %v731_v31, 0.0  ;;  %v795_v39 = vmul.f32 0.02, %v731_v31  ;;  %vm758_vm6 = vcmp.ge.f32.partialorder %v726_v16, 0.0  ;;  %v2410_v20 = vld [vmem:[#allocation6 + $0x1c0] ss:$8 sps:$4 sm:$0xff]  }
 0x1a3   :  { %1326 = vmatpush1.bf16.msra.mxu0 %v2386_v28  ;;  %1306 = vmatprep.mubr.bf16.mxu0 %v857_v35  ;;  %v3042_v19 = vsel %vm759_vm4, %v727_v5, %v791_v34  ;;  %vm762_vm7 = vcmp.ge.f32.partialorder %v730_v57, 0.0  ;;  %v790_v22 = vmul.f32 0.02, %v726_v16  ;;  %v794_v36 = vmul.f32 0.02, %v730_v57  ;;  %v2423_v43 = vld [vmem:[%s3342_s7] sm:$0xff]  }
 0x1a4   :  { %1327 = vmatprep.subr.bf16.mxu0 %v2391_v41  ;;  %v3044_v61 = vsel %vm763_vm5, %v731_v31, %v795_v39  ;;  %v735_v30 = vadd.f32 %v2971_v42, %v2943_v56  ;;  %v739_v58 = vadd.f32 %v2971_v42, %v2947_v23  ;;  %v734_v38 = vadd.f32 %v2973_v12, %v2950_v37  ;;  %v2400_v35 = vld [vmem:[#allocation6 + $0x184] ss:$8 sps:$4 sm:$0xff]   ;;  %v2407_v28 = vld [vmem:[#allocation6 + $0x1b0] ss:$8 sps:$4 sm:$0xff]   ;;  %v2415_v5 = vld [vmem:[#allocation6 + $0x1d4] ss:$8 sps:$4 sm:$0xff]  }
 0x1a5   :  { %v851_v60 = vpack.c.bf16 %v3044_v61, %v3042_v19  ;;  %v3054_v0 = vsel %vm758_vm6, %v726_v16, %v790_v22  ;;  %v3056_v25 = vsel %vm762_vm7, %v730_v57, %v794_v36  ;;  %v738_v3 = vadd.f32 %v2973_v12, %v2953_v63  ;;  %v2413_v41 = vld [vmem:[#allocation6 + $0x1d0] ss:$8 sps:$4 sm:$0xff]   ;;  %v2416_v31 = vld [vmem:[#allocation6 + $0x1e0] ss:$8 sps:$4 sm:$0xff]   ;;  %v2421_v16 = vld [vmem:[#allocation6 + $0x1f4] ss:$8 sps:$4 sm:$0xff]  }
 0x1a6   :  { %v850_v56 = vpack.c.bf16 %v3056_v25, %v3054_v0  ;;  %vm767_vm8 = vcmp.ge.f32.partialorder %v735_v30, 0.0  ;;  %vm771_vm9 = vcmp.ge.f32.partialorder %v739_v58, 0.0  ;;  %v799_v23 = vmul.f32 0.02, %v735_v30  ;;  %v2419_v34 = vld [vmem:[#allocation6 + $0x1f0] ss:$8 sps:$4 sm:$0xff]  }
 0x1a7   :  { %1328 = vmatpush1.bf16.msra.mxu0 %v2389_v21  ;;  %v803_v44 = vmul.f32 0.02, %v739_v58  ;;  %vm766_vm10 = vcmp.ge.f32.partialorder %v734_v38, 0.0  ;;  %vm770_vm11 = vcmp.ge.f32.partialorder %v738_v3, 0.0  ;;  %v798_v37 = vmul.f32 0.02, %v734_v38 }
 0x1a8   :  { %1329 = vmatprep.subr.bf16.mxu0 %v2394_v10  ;;  %v3062_v32 = vsel %vm767_vm8, %v735_v30, %v799_v23  ;;  %v802_v4 = vmul.f32 0.02, %v738_v3  ;;  %v743_v63 = vadd.f32 %v2971_v42, %v2956_v11  ;;  %vm779_vm12 = vcmp.ge.f32.partialorder %v2976_v8, 0.0  ;;  %v2422_v57 = vld [vmem:[%s3342_s7 + $0x40] sm:$0xff]   ;;  %v2424_v33 = vld [vmem:[%s3342_s7 + $0x48] sm:$0xff]   ;;  %v2427_v39 = vld [vmem:[%s3342_s7 + $0x10] sm:$0xff]  }
 0x1a9   :  { %v835_v50 = vsel %vm771_vm9, %v739_v58, %v803_v44  ;;  %v830_v51 = vsel %vm766_vm10, %v734_v38, %v798_v37  ;;  %v811_v47 = vmul.f32 0.02, %v2976_v8  ;;  %v742_v27 = vadd.f32 %v2973_v12, %v2959_v6  ;;  %2166 = vmatprep.subr.bf16.mxu1 %v2422_v57  ;;  %v2425_v21 = vld [vmem:[%s3342_s7 + $0x8] sm:$0xff]   ;;  %v2428_v19 = vld [vmem:[%s3342_s7 + $0x58] sm:$0xff]   ;;  %v2430_v36 = vld [vmem:[%s3342_s7 + $0x60] sm:$0xff]  }
 0x1aa   :  { %1307 = vmatmul.mubr.bf16.gmra.mrb[12].mxu0 %v856_v9  ;;  %v855_v49 = vpack.c.bf16 %v835_v50, %v3062_v32  ;;  %v834_v53 = vsel %vm770_vm11, %v738_v3, %v802_v4  ;;  %vm775_vm13 = vcmp.ge.f32.partialorder %v743_v63, 0.0  ;;  %v807_v55 = vmul.f32 0.02, %v743_v63  ;;  %v2403_v9 = vld [vmem:[#allocation6 + $0x194] ss:$8 sps:$4 sm:$0xff]   ;;  %2167 = vmatpush3.bf16.msra.mxu1 %v2423_v43  ;;  %v2431_v10 = vld [vmem:[%s3342_s7 + $0x20] sm:$0xff]  }
 0x1ab   :  { %1330 = vmatpush1.bf16.msra.mxu0 %v2392_v40  ;;  %1349 = vmatprep.mubr.bf16.mxu0 %v847_v54  ;;  %v854_v13 = vpack.c.bf16 %v834_v53, %v830_v51  ;;  %v843_v11 = vsel %vm779_vm12, %v2976_v8, %v811_v47  ;;  %v746_v42 = vadd.f32 %v2973_v12, %v2915_v52  ;;  %vm774_vm14 = vcmp.ge.f32.partialorder %v742_v27, 0.0  ;;  %v2401_v8 = vld [vmem:[#allocation6 + $0x190] ss:$8 sps:$4 sm:$0xff]   ;;  %v2404_v52 = vld [vmem:[#allocation6 + $0x1a0] ss:$8 sps:$4 sm:$0xff]  }
 0x1ac   :  { %1331 = vmatprep.subr.bf16.mxu0 %v2397_v14  ;;  %v839_v15 = vsel %vm775_vm13, %v743_v63, %v807_v55  ;;  %v806_v6 = vmul.f32 0.02, %v742_v27  ;;  %v2409_v12 = vld [vmem:[#allocation6 + $0x1b4] ss:$8 sps:$4 sm:$0xff]   ;;  %v2418_v54 = vld [vmem:[#allocation6 + $0x1e4] ss:$8 sps:$4 sm:$0xff]   ;;  %2168 = vmatprep.subr.bf16.mxu1 %v2424_v33 }
 0x1ad   :  { %v859_v59 = vpack.c.bf16 %v843_v11, %v839_v15  ;;  %vm778_vm15 = vcmp.ge.f32.partialorder %v746_v42, 0.0  ;;  %v810_v29 = vmul.f32 0.02, %v746_v42  ;;  %v2429_v22 = vld [vmem:[%s3342_s7 + $0x18] sm:$0xff]   ;;  %v2432_v61 = vld [vmem:[%s3342_s7 + $0x68] sm:$0xff]   ;;  %v2434_v58 = vld [vmem:[%s3342_s7 + $0x70] sm:$0xff]  }
 0x1ae   :  { %v838_v26 = vsel %vm774_vm14, %v742_v27, %v806_v6  ;;  %2169 = vmatpush3.bf16.msra.mxu1 %v2425_v21  ;;  %v2433_v30 = vld [vmem:[%s3342_s7 + $0x28] sm:$0xff]   ;;  %v2435_v38 = vld [vmem:[%s3342_s7 + $0x30] sm:$0xff]   ;;  %v2437_v0 = vld [vmem:[%s3342_s7 + $0x38] sm:$0xff]  }
 0x1af   :  { %1332 = vmatpush1.bf16.msra.mxu0 %v2395_v17  ;;  %v842_v18 = vsel %vm778_vm15, %v746_v42, %v810_v29 }
 0x1b0   :  { %1333 = vmatprep.subr.bf16.mxu0 %v2400_v35  ;;  %v858_v62 = vpack.c.bf16 %v842_v18, %v838_v26 }
 0x1b3   :  { %1334 = vmatpush1.bf16.msra.mxu0 %v2398_v45 }
 0x1b4   :  { %1335 = vmatprep.subr.bf16.mxu0 %v2403_v9 }
 0x1b7   :  { %1336 = vmatpush1.bf16.msra.mxu0 %v2401_v8 }
 0x1b8   :  { %1337 = vmatprep.subr.bf16.mxu0 %v2406_v24 }
 0x1bb   :  { %1338 = vmatpush1.bf16.msra.mxu0 %v2404_v52 }
 0x1bc   :  { %1339 = vmatprep.subr.bf16.mxu0 %v2409_v12 }
 0x1bf   :  { %1340 = vmatpush1.bf16.msra.mxu0 %v2407_v28 }
 0x1c0   :  { %1341 = vmatprep.subr.bf16.mxu0 %v2412_v2 }
 0x1c3   :  { %1342 = vmatpush1.bf16.msra.mxu0 %v2410_v20 }
 0x1c4   :  { %1343 = vmatprep.subr.bf16.mxu0 %v2415_v5 }
 0x1c7   :  { %1344 = vmatpush1.bf16.msra.mxu0 %v2413_v41 }
 0x1c8   :  { %1345 = vmatprep.subr.bf16.mxu0 %v2418_v54 }
 0x1cb   :  { %1346 = vmatpush1.bf16.msra.mxu0 %v2416_v31 }
 0x1cc   :  { %1347 = vmatprep.subr.bf16.mxu0 %v2421_v16 }
 0x1cf   :  { %1348 = vmatpush1.bf16.msra.mxu0 %v2419_v34 }
 0x1d2   :  { %1350 = vmatmul.mubr.bf16.vlgmr.msra.gmra.mrb[0].mxu0 %v846_v48  ;;  %v2426_v48 = vld [vmem:[%s3342_s7 + $0x50] sm:$0xff]  }
 0x1d3   :  { %1359 = vmatprep.mubr.bf16.mxu0 %v851_v60  ;;  %2170 = vmatprep.subr.bf16.mxu1 %v2426_v48  ;;  %v2436_v60 = vld [vmem:[%s3342_s7 + $0x78] sm:$0xff]  }
 0x1d4   :  { %2171 = vmatpush3.bf16.msra.mxu1 %v2427_v39 }
 0x1d5   :  { %2172 = vmatprep.subr.bf16.mxu1 %v2428_v19 }
 0x1d8   :  { %2173 = vmatpush3.bf16.msra.mxu1 %v2429_v22 }
 0x1d9   :  { %2174 = vmatprep.subr.bf16.mxu1 %v2430_v36 }
 0x1da   :  { %1360 = vmatmul.mubr.bf16.gmra.mrb[4].mxu0 %v850_v56 }
 0x1db   :  { %1369 = vmatprep.mubr.bf16.mxu0 %v855_v49 }
 0x1dc   :  { %2175 = vmatpush3.bf16.msra.mxu1 %v2431_v10 }
 0x1dd   :  { %2176 = vmatprep.subr.bf16.mxu1 %v2432_v61 }
 0x1e0   :  { %2177 = vmatpush3.bf16.msra.mxu1 %v2433_v30 }
 0x1e1   :  { %2178 = vmatprep.subr.bf16.mxu1 %v2434_v58 }
 0x1e2   :  { %1370 = vmatmul.mubr.bf16.gmra.mrb[8].mxu0 %v854_v13 }
 0x1e3   :  { %1379 = vmatprep.mubr.bf16.mxu0 %v859_v59 }
 0x1e4   :  { %2179 = vmatpush3.bf16.msra.mxu1 %v2435_v38 }
 0x1e5   :  { %2180 = vmatprep.subr.bf16.mxu1 %v2436_v60 }
 0x1e8   :  { %2181 = vmatpush3.bf16.msra.mxu1 %v2437_v0 }
 0x1ea   :  { %1380 = vmatmul.mubr.bf16.gmra.mrb[12].mxu0 %v858_v62 }
 0x2a5   :  { %v3131_v25 = vpop.f32.mrb[0].mxu0 }
 0x2a6   :  { %v3133_v3 = vpop.f32.mrb[1].mxu0  ;;  %v1418_v56 = vmul.f32 %v3131_v25, %v3131_v25 }
 0x2a7   :  { %v3135_v40 = vpop.f32.mrb[2].mxu0  ;;  %v1419_v14 = vmul.f32 %v3133_v3, %v3133_v3 }
 0x2a8   :  { %v1392_v23 = vadd.f32 %v3135_v40, %v3131_v25  ;;  %v1420_v44 = vmul.f32 %v3135_v40, %v3135_v40  ;;  %v3143_v37 = vpop.f32.mrb[3].mxu0 }
 0x2a9   :  { %v1405_v32 = vadd.f32 %v3143_v37, %v3133_v3  ;;  %v1421_v4 = vmul.f32 %v3143_v37, %v3143_v37 }
 0x2aa   :  { %v1434_v63 = vadd.f32 %v1420_v44, %v1418_v56 }
 0x2ab   :  { %v1447_v50 = vadd.f32 %v1421_v4, %v1419_v14 }
 0x2ad   :  { %v3151_v51 = vpop.f32.mrb[4].mxu0 }
 0x2ae   :  { %v1393_v47 = vadd.f32 %v1392_v23, %v3151_v51  ;;  %v1422_v27 = vmul.f32 %v3151_v51, %v3151_v51  ;;  %v3156_v49 = vpop.f32.mrb[5].mxu0 }
 0x2af   :  { %v1406_v53 = vadd.f32 %v1405_v32, %v3156_v49  ;;  %v1423_v55 = vmul.f32 %v3156_v49, %v3156_v49  ;;  %v3161_v17 = vpop.f32.mrb[6].mxu0 }
 0x2b0   :  { %v1435_v13 = vadd.f32 %v1434_v63, %v1422_v27  ;;  %v1394_v11 = vadd.f32 %v1393_v47, %v3161_v17  ;;  %v1424_v42 = vmul.f32 %v3161_v17, %v3161_v17  ;;  %v3166_v35 = vpop.f32.mrb[7].mxu0 }
 0x2b1   :  { %v1448_v15 = vadd.f32 %v1447_v50, %v1423_v55  ;;  %v1407_v6 = vadd.f32 %v1406_v53, %v3166_v35  ;;  %v1425_v59 = vmul.f32 %v3166_v35, %v3166_v35 }
 0x2b2   :  { %v1436_v29 = vadd.f32 %v1435_v13, %v1424_v42 }
 0x2b3   :  { %v1449_v26 = vadd.f32 %v1448_v15, %v1425_v59 }
 0x2b5   :  { %v3171_v45 = vpop.f32.mrb[8].mxu0 }
 0x2b6   :  { %v1395_v18 = vadd.f32 %v1394_v11, %v3171_v45  ;;  %v1426_v9 = vmul.f32 %v3171_v45, %v3171_v45  ;;  %v3176_v62 = vpop.f32.mrb[9].mxu0 }
 0x2b7   :  { %v1408_v8 = vadd.f32 %v1407_v6, %v3176_v62  ;;  %v1427_v24 = vmul.f32 %v3176_v62, %v3176_v62  ;;  %v3181_v52 = vpop.f32.mrb[10].mxu0 }
 0x2b8   :  { %v1437_v12 = vadd.f32 %v1436_v29, %v1426_v9  ;;  %v1396_v28 = vadd.f32 %v1395_v18, %v3181_v52  ;;  %v1428_v2 = vmul.f32 %v3181_v52, %v3181_v52  ;;  %v3186_v20 = vpop.f32.mrb[11].mxu0 }
 0x2b9   :  { %v1450_v5 = vadd.f32 %v1449_v26, %v1427_v24  ;;  %v1409_v41 = vadd.f32 %v1408_v8, %v3186_v20  ;;  %v1429_v54 = vmul.f32 %v3186_v20, %v3186_v20 }
 0x2ba   :  { %v1438_v31 = vadd.f32 %v1437_v12, %v1428_v2 }
 0x2bb   :  { %v1451_v16 = vadd.f32 %v1450_v5, %v1429_v54 }
 0x2bd   :  { %v3191_v34 = vpop.f32.mrb[12].mxu0 }
 0x2be   :  { %v1397_v57 = vadd.f32 %v1396_v28, %v3191_v34  ;;  %v1430_v43 = vmul.f32 %v3191_v34, %v3191_v34  ;;  %v3196_v33 = vpop.f32.mrb[13].mxu0 }
 0x2bf   :  { %v1410_v21 = vadd.f32 %v1409_v41, %v3196_v33  ;;  %v1431_v48 = vmul.f32 %v3196_v33, %v3196_v33  ;;  %v1385_v39 = vpop.f32.mrb[14].mxu0 }
 0x2c0   :  { %v1439_v19 = vadd.f32 %v1438_v31, %v1430_v43  ;;  %v1398_v22 = vadd.f32 %v1397_v57, %v1385_v39  ;;  %v1432_v36 = vmul.f32 %v1385_v39, %v1385_v39  ;;  %v1387_v10 = vpop.f32.mrb[15].mxu0 }
 0x2c1   :  { %v1452_v61 = vadd.f32 %v1451_v16, %v1431_v48  ;;  %v1411_v30 = vadd.f32 %v1410_v21, %v1387_v10  ;;  %v1433_v58 = vmul.f32 %v1387_v10, %v1387_v10  ;;  %v1390_v48 = vld [vmem:[%s3340_s5] sm:$0x3] }
 0x2c2   :  { %v1399_v38 = vrot.slane %v1398_v22, 4  ;;  %v1440_v60 = vadd.f32 %v1439_v19, %v1432_v36  ;;  %v1478_v19 = vrot.slane %v1390_v48, %v2812_v1 }
 0x2c3   :  { %v1412_v0 = vrot.slane %v1411_v30, 4  ;;  %v1453_v56 = vadd.f32 %v1452_v61, %v1433_v58 }
 0x2c4   :  { %v1400_v23 = vadd.f32 %v1399_v38, %v1398_v22  ;;  %v1441_v44 = vrot.slane %v1440_v60, 4  ;;  %v1482_v22 = vrot.slane %v1390_v48, %v2820_v7 }
 0x2c5   :  { %v1413_v14 = vadd.f32 %v1412_v0, %v1411_v30  ;;  %v1454_v32 = vrot.slane %v1453_v56, 4 }
 0x2c6   :  { %v1401_v4 = vrot.slane %v1400_v23, 2  ;;  %v1442_v63 = vadd.f32 %v1441_v44, %v1440_v60 }
 0x2c7   :  { %v1414_v50 = vrot.slane %v1413_v14, 2  ;;  %v1455_v47 = vadd.f32 %v1454_v32, %v1453_v56 }
 0x2c8   :  { %v1402_v27 = vadd.f32 %v1401_v4, %v1400_v23  ;;  %v1443_v53 = vrot.slane %v1442_v63, 2 }
 0x2c9   :  { %v1415_v55 = vadd.f32 %v1414_v50, %v1413_v14  ;;  %v1456_v13 = vrot.slane %v1455_v47, 2 }
 0x2ca   :  { %v1403_v11 = vrot.slane %v1402_v27, 1  ;;  %v1444_v42 = vadd.f32 %v1443_v53, %v1442_v63 }
 0x2cb   :  { %v1416_v15 = vrot.slane %v1415_v55, 1  ;;  %v1457_v6 = vadd.f32 %v1456_v13, %v1455_v47 }
 0x2cc   :  { %v1404_v59 = vadd.f32 %v1403_v11, %v1402_v27  ;;  %v1445_v29 = vrot.slane %v1444_v42, 1 }
 0x2cd   :  { %v1417_v26 = vadd.f32 %v1416_v15, %v1415_v55  ;;  %v1458_v18 = vrot.slane %v1457_v6, 1 }
 0x2ce   :  { %v1446_v9 = vadd.f32 %v1445_v29, %v1444_v42  ;;  %v1460_v8 = vmul.f32 0.015625, %v1404_v59 }
 0x2cf   :  { %v1459_v24 = vadd.f32 %v1458_v18, %v1457_v6  ;;  %v1461_v12 = vmul.f32 0.015625, %v1417_v26 }
 0x2d0   :  { %v1462_v28 = vmul.f32 0.015625, %v1446_v9  ;;  %v1464_v2 = vmul.f32 %v1460_v8, %v1460_v8 }
 0x2d1   :  { %v1463_v5 = vmul.f32 0.015625, %v1459_v24  ;;  %v1465_v41 = vmul.f32 %v1461_v12, %v1461_v12 }
 0x2d2   :  { %v1466_v54 = vsub.f32 %v1462_v28, %v1464_v2 }
 0x2d3   :  { %v1467_v31 = vsub.f32 %v1463_v5, %v1465_v41 }
 0x2d4   :  { %v1468_v16 = vmax.f32 %v1466_v54, 0.0 }
 0x2d5   :  { %v1469_v57 = vmax.f32 %v1467_v31, 0.0 }
 0x2d6   :  { %v1470_v43 = vadd.f32 1e-05, %v1468_v16 }
 0x2d7   :  { %v1471_v21 = vadd.f32 1e-05, %v1469_v57 }
 0x2d8   :  { %2446 = vrsqrt.f32 %v1470_v43 }
 0x2d9   :  { %2448 = vrsqrt.f32 %v1471_v21 }
 0x2e2   :  { %v2447_v36 = vpop.eup %2446 }
 0x2e3   :  { %v2449_v61 = vpop.eup %2448  ;;  %v1485_v30 = vmul.f32 %v2447_v36, %v1478_v19 }
 0x2e4   :  { %v1486_v58 = vmul.f32 %v2449_v61, %v1482_v22 }
 0x2e5   :  { %v1487_v38 = vmul.f32 %v1485_v30, %v1460_v8  ;;  %v1511_v60 = vrot.slane %v1485_v30, %v2812_v1 }
 0x2e6   :  { %v1488_v0 = vmul.f32 %v1486_v58, %v1461_v12  ;;  %v1515_v56 = vrot.slane %v1486_v58, %v2812_v1 }
 0x2e7   :  { %v3208_v23 = vmul.f32 %v1511_v60, %v1385_v39  ;;  %v1516_v44 = vmul.f32 %v1511_v60, %v3131_v25  ;;  %v1518_v14 = vmul.f32 %v1511_v60, %v3135_v40  ;;  %v1520_v32 = vmul.f32 %v1511_v60, %v3151_v51 }
 0x2e8   :  { %v1491_v4 = vcombine.low %v1487_v38, %v1488_v0  ;;  %v1531_v63 = vmul.f32 %v1515_v56, %v1387_v10  ;;  %v1517_v50 = vmul.f32 %v1515_v56, %v3133_v3  ;;  %v1519_v47 = vmul.f32 %v1515_v56, %v3143_v37  ;;  %v1391_v3 = vld [vmem:[%s3341_s6] sm:$0x3] }
 0x2e9   :  { %v1521_v27 = vmul.f32 %v1515_v56, %v3156_v49  ;;  %v1523_v53 = vmul.f32 %v1515_v56, %v3166_v35  ;;  %v1522_v55 = vmul.f32 %v1511_v60, %v3161_v17  ;;  %v1525_v39 = vmul.f32 %v1515_v56, %v3176_v62 }
 0x2ea   :  { %v1498_v25 = vrot.slane %v1491_v4, %v2909_v46  ;;  %v1527_v40 = vmul.f32 %v1515_v56, %v3186_v20  ;;  %v1524_v51 = vmul.f32 %v1511_v60, %v3171_v45  ;;  %v1526_v10 = vmul.f32 %v1511_v60, %v3181_v52 }
 0x2eb   :  { %v1529_v37 = vmul.f32 %v1515_v56, %v3196_v33  ;;  %v3228_v49 = vmul.f32 %v1511_v60, %v3191_v34 }
 0x2ec   :  { %v1505_v17 = vrot.slane %v1498_v25, %v2909_v46 }
 0x2ee   :  { %v1507_v35 = vsub.f32 %v1391_v3, %v1505_v17 }
 0x2f0   :  { %v3232_v62 = vrot.slane %v1507_v35, %v2812_v1  ;;  %v1540_v20 = vrot.slane %v1507_v35, %v2820_v7 }
 0x2f2   :  { %v3235_v45 = vadd.f32 %v1540_v20, %v1531_v63  ;;  %v1544_v52 = vadd.f32 %v1540_v20, %v1517_v50  ;;  %v1546_v13 = vadd.f32 %v1540_v20, %v1519_v47  ;;  %v1543_v11 = vadd.f32 %v3232_v62, %v1516_v44 }
 0x2f3   :  { %v1545_v42 = vadd.f32 %v3232_v62, %v1518_v14  ;;  %v1548_v33 = vadd.f32 %v1540_v20, %v1521_v27  ;;  %v1550_v15 = vadd.f32 %v1540_v20, %v1523_v53  ;;  %v1547_v34 = vadd.f32 %v3232_v62, %v1520_v32 }
 0x2f4   :  { %v1590_v46 = vmul.f32 0.02, %v3235_v45  ;;  %vm1560_vm0 = vcmp.ge.f32.partialorder %v1544_v52, 0.0  ;;  %vm1562_vm1 = vcmp.ge.f32.partialorder %v1546_v13, 0.0  ;;  %v1576_v6 = vmul.f32 0.02, %v1544_v52 }
 0x2f5   :  { %v1578_v59 = vmul.f32 0.02, %v1546_v13  ;;  %vm1559_vm2 = vcmp.ge.f32.partialorder %v1543_v11, 0.0  ;;  %vm1561_vm3 = vcmp.ge.f32.partialorder %v1545_v42, 0.0  ;;  %v1575_v7 = vmul.f32 0.02, %v1543_v11 }
 0x2f6   :  { %v1592_v29 = vsel %vm1560_vm0, %v1544_v52, %v1576_v6  ;;  %v1577_v26 = vmul.f32 0.02, %v1545_v42  ;;  %vm1564_vm4 = vcmp.ge.f32.partialorder %v1548_v33, 0.0  ;;  %vm1566_vm5 = vcmp.ge.f32.partialorder %v1550_v15, 0.0 }
 0x2f7   :  { %v1594_v18 = vsel %vm1562_vm1, %v1546_v13, %v1578_v59  ;;  %v1591_v9 = vsel %vm1559_vm2, %v1543_v11, %v1575_v7  ;;  %v1580_v8 = vmul.f32 0.02, %v1548_v33  ;;  %v1582_v24 = vmul.f32 0.02, %v1550_v15 }
 0x2f8   :  { %v1608_v12 = vpack.c.bf16 %v1594_v18, %v1592_v29  ;;  %v1593_v28 = vsel %vm1561_vm3, %v1545_v42, %v1577_v26  ;;  %v1549_v2 = vadd.f32 %v3232_v62, %v1522_v55  ;;  %vm1563_vm6 = vcmp.ge.f32.partialorder %v1547_v34, 0.0 }
 0x2f9   :  { %v1607_v5 = vpack.c.bf16 %v1593_v28, %v1591_v9  ;;  %v1596_v41 = vsel %vm1564_vm4, %v1548_v33, %v1580_v8  ;;  %v1598_v54 = vsel %vm1566_vm5, %v1550_v15, %v1582_v24  ;;  %v1579_v31 = vmul.f32 0.02, %v1547_v34 }
 0x2fa   :  { %1775 = vmatprep.mubr.bf16.mxu1 %v1608_v12  ;;  %v1610_v16 = vpack.c.bf16 %v1598_v54, %v1596_v41  ;;  %vm1565_vm7 = vcmp.ge.f32.partialorder %v1549_v2, 0.0  ;;  %v1581_v57 = vmul.f32 0.02, %v1549_v2  ;;  %v1552_v43 = vadd.f32 %v1540_v20, %v1525_v39 }
 0x2fb   :  { %1776 = vmatmul.mubr.bf16.vlgmr.msra.gmra.mrb[32].mxu1 %v1607_v5  ;;  %v1595_v21 = vsel %vm1563_vm6, %v1547_v34, %v1579_v31  ;;  %v1554_v48 = vadd.f32 %v1540_v20, %v1527_v40  ;;  %v1551_v19 = vadd.f32 %v3232_v62, %v1524_v51  ;;  %v1553_v22 = vadd.f32 %v3232_v62, %v1526_v10 }
 0x2fc   :  { %1783 = vmatprep.mubr.bf16.mxu1 %v1610_v16  ;;  %v1597_v36 = vsel %vm1565_vm7, %v1549_v2, %v1581_v57  ;;  %vm1568_vm8 = vcmp.ge.f32.partialorder %v1552_v43, 0.0  ;;  %v1584_v61 = vmul.f32 0.02, %v1552_v43  ;;  %v1556_v30 = vadd.f32 %v1540_v20, %v1529_v37 }
 0x2fd   :  { %v1609_v58 = vpack.c.bf16 %v1597_v36, %v1595_v21  ;;  %vm1570_vm9 = vcmp.ge.f32.partialorder %v1554_v48, 0.0  ;;  %v1586_v38 = vmul.f32 0.02, %v1554_v48  ;;  %vm1567_vm10 = vcmp.ge.f32.partialorder %v1551_v19, 0.0 }
 0x2fe   :  { %v1600_v60 = vsel %vm1568_vm8, %v1552_v43, %v1584_v61  ;;  %vm1569_vm11 = vcmp.ge.f32.partialorder %v1553_v22, 0.0  ;;  %v1583_v0 = vmul.f32 0.02, %v1551_v19  ;;  %v1585_v56 = vmul.f32 0.02, %v1553_v22 }
 0x2ff   :  { %v1602_v44 = vsel %vm1570_vm9, %v1554_v48, %v1586_v38  ;;  %vm1572_vm12 = vcmp.ge.f32.partialorder %v1556_v30, 0.0  ;;  %vm1574_vm13 = vcmp.ge.f32.partialorder %v3235_v45, 0.0  ;;  %v1588_v14 = vmul.f32 0.02, %v1556_v30 }
 0x300   :  { %v1612_v32 = vpack.c.bf16 %v1602_v44, %v1600_v60  ;;  %v1599_v4 = vsel %vm1567_vm10, %v1551_v19, %v1583_v0  ;;  %v1601_v63 = vsel %vm1569_vm11, %v1553_v22, %v1585_v56  ;;  %v1606_v50 = vsel %vm1574_vm13, %v3235_v45, %v1590_v46 }
 0x301   :  { %v1611_v47 = vpack.c.bf16 %v1601_v63, %v1599_v4  ;;  %v1604_v27 = vsel %vm1572_vm12, %v1556_v30, %v1588_v14  ;;  %v1555_v53 = vadd.f32 %v3232_v62, %v3228_v49  ;;  %v1557_v55 = vadd.f32 %v3232_v62, %v3208_v23 }
 0x302   :  { %v1614_v39 = vpack.c.bf16 %v1606_v50, %v1604_v27  ;;  %v2536_v37 = vmov 0.0|0.0   ;;  %vm2537_vm0 = vmmov 0   ;;  %v2538_v49 = vmov 0.0  }
 0x303   :  { %1784 = vmatmul.mubr.bf16.gmra.mrb[36].mxu1 %v1609_v58  ;;  %vm1571_vm14 = vcmp.ge.f32.partialorder %v1555_v53, 0.0  ;;  %vm1573_vm15 = vcmp.ge.f32.partialorder %v1557_v55, 0.0  ;;  %v1587_v25 = vmul.f32 0.02, %v1555_v53  ;;  %v1589_v40 = vmul.f32 0.02, %v1557_v55  ;;  %2234 = vmatprep.subr.bf16.mxu1 %v2536_v37 }
 0x304   :  { %1791 = vmatprep.mubr.bf16.mxu1 %v1612_v32  ;;  %vm1810_vm1 = vcmask 523264   ;;  %vm2027_vm11 = vcmask 516096  }
 0x305   :  { %v1603_v51 = vsel %vm1571_vm14, %v1555_v53, %v1587_v25  ;;  %v1605_v10 = vsel %vm1573_vm15, %v1557_v55, %v1589_v40  ;;  %vm3301_vm8 = vmpackc.low %vm1810_vm1, %vm1810_vm1 }
 0x306   :  { %v1613_v3 = vpack.c.bf16 %v1605_v10, %v1603_v51 }
 0x30b   :  { %1792 = vmatmul.mubr.bf16.gmra.mrb[40].mxu1 %v1611_v47 }
 0x30c   :  { %1799 = vmatprep.mubr.bf16.mxu1 %v1614_v39 }
 0x313   :  { %1800 = vmatmul.mubr.bf16.gmra.mrb[44].mxu1 %v1613_v3 }
 0x314   :  { %2231 = vmatprep.mubr.msk.f32.mxu1 %vm2537_vm0, %v2538_v49 }
 0x3ce   :  { %v2182_v23 = vpop.f32.mrb[32].mxu1 }
 0x3cf   :  { %v2183_v17 = vpop.f32.mrb[33].mxu1 }
 0x3d0   :  { %v3251_v35 = vadd.f32 %v2183_v17, %v2182_v23  ;;  %v2185_v62 = vpop.f32.mrb[34].mxu1 }
 0x3d1   :  { %v2186_v20 = vpop.f32.mrb[35].mxu1 }
 0x3d2   :  { %v1832_v45 = vmul.f32 %v3251_v35, %v3251_v35  ;;  %v3255_v52 = vadd.f32 %v2186_v20, %v2185_v62  ;;  %v1811_v13 = vsel %vm1810_vm1, %v3251_v35, 0.0 }
 0x3d4   :  { %v1812_v11 = vsel %vm1810_vm1, %v3255_v52, 0.0  ;;  %v1833_v42 = vmul.f32 %v3255_v52, %v3255_v52  ;;  %v1840_v15 = vsel %vm1810_vm1, %v1832_v45, 0.0 }
 0x3d5   :  { %v1813_v33 = vadd.f32 %v1812_v11, %v1811_v13 }
 0x3d6   :  { %v1841_v34 = vsel %vm1810_vm1, %v1833_v42, 0.0  ;;  %v2188_v46 = vpop.f32.mrb[36].mxu1 }
 0x3d7   :  { %v1842_v6 = vadd.f32 %v1841_v34, %v1840_v15  ;;  %v2189_v59 = vpop.f32.mrb[37].mxu1 }
 0x3d8   :  { %v3265_v7 = vadd.f32 %v2189_v59, %v2188_v46  ;;  %v2191_v29 = vpop.f32.mrb[38].mxu1 }
 0x3d9   :  { %v2192_v26 = vpop.f32.mrb[39].mxu1 }
 0x3da   :  { %v1814_v18 = vsel %vm1810_vm1, %v3265_v7, 0.0  ;;  %v1834_v9 = vmul.f32 %v3265_v7, %v3265_v7  ;;  %v3271_v8 = vadd.f32 %v2192_v26, %v2191_v29 }
 0x3db   :  { %v1815_v24 = vadd.f32 %v1814_v18, %v1813_v33 }
 0x3dc   :  { %v1843_v12 = vsel %vm1810_vm1, %v1834_v9, 0.0  ;;  %v1816_v28 = vsel %vm1810_vm1, %v3271_v8, 0.0  ;;  %v1835_v2 = vmul.f32 %v3271_v8, %v3271_v8 }
 0x3dd   :  { %v1844_v5 = vadd.f32 %v1843_v12, %v1842_v6  ;;  %v1817_v41 = vadd.f32 %v1816_v28, %v1815_v24  ;;  %v1808_v24 = vld [vmem:[%s3343_s8] sm:$0x1] }
 0x3de   :  { %v1845_v54 = vsel %vm1810_vm1, %v1835_v2, 0.0  ;;  %v2194_v31 = vpop.f32.mrb[40].mxu1  ;;  %v1809_v2 = vld [vmem:[%s3344_s9] sm:$0x1] }
 0x3df   :  { %v1846_v16 = vadd.f32 %v1845_v54, %v1844_v5  ;;  %v2195_v57 = vpop.f32.mrb[41].mxu1 }
 0x3e0   :  { %v2196_v43 = vadd.f32 %v2195_v57, %v2194_v31  ;;  %v2197_v21 = vpop.f32.mrb[42].mxu1 }
 0x3e1   :  { %v2198_v48 = vpop.f32.mrb[43].mxu1 }
 0x3e2   :  { %v1818_v19 = vsel %vm1810_vm1, %v2196_v43, 0.0  ;;  %v1836_v22 = vmul.f32 %v2196_v43, %v2196_v43  ;;  %v2199_v36 = vadd.f32 %v2198_v48, %v2197_v21 }
 0x3e3   :  { %v1819_v61 = vadd.f32 %v1818_v19, %v1817_v41 }
 0x3e4   :  { %v1847_v30 = vsel %vm1810_vm1, %v1836_v22, 0.0  ;;  %v1820_v58 = vsel %vm1810_vm1, %v2199_v36, 0.0  ;;  %v1837_v38 = vmul.f32 %v2199_v36, %v2199_v36 }
 0x3e5   :  { %v1848_v60 = vadd.f32 %v1847_v30, %v1846_v16  ;;  %v1821_v0 = vadd.f32 %v1820_v58, %v1819_v61 }
 0x3e6   :  { %v1849_v56 = vsel %vm1810_vm1, %v1837_v38, 0.0  ;;  %v2200_v44 = vpop.f32.mrb[44].mxu1 }
 0x3e7   :  { %v1850_v14 = vadd.f32 %v1849_v56, %v1848_v60  ;;  %v2201_v32 = vpop.f32.mrb[45].mxu1 }
 0x3e8   :  { %v2202_v4 = vadd.f32 %v2201_v32, %v2200_v44  ;;  %v2203_v63 = vpop.f32.mrb[46].mxu1 }
 0x3e9   :  { %v2204_v50 = vpop.f32.mrb[47].mxu1 }
 0x3ea   :  { %v1822_v47 = vsel %vm1810_vm1, %v2202_v4, 0.0  ;;  %v1838_v27 = vmul.f32 %v2202_v4, %v2202_v4  ;;  %v2205_v53 = vadd.f32 %v2204_v50, %v2203_v63 }
 0x3eb   :  { %v1823_v55 = vadd.f32 %v1822_v47, %v1821_v0 }
 0x3ec   :  { %v1851_v39 = vsel %vm1810_vm1, %v1838_v27, 0.0  ;;  %v1824_v25 = vsel %vm1810_vm1, %v2205_v53, 0.0  ;;  %v1839_v40 = vmul.f32 %v2205_v53, %v2205_v53 }
 0x3ed   :  { %v1852_v51 = vadd.f32 %v1851_v39, %v1850_v14  ;;  %v1825_v10 = vadd.f32 %v1824_v25, %v1823_v55 }
 0x3ee   :  { %v1853_v3 = vsel %vm1810_vm1, %v1839_v40, 0.0 }
 0x3ef   :  { %v1826_v49 = vrot.slane %v1825_v10, 4  ;;  %v1854_v23 = vadd.f32 %v1853_v3, %v1852_v51 }
 0x3f1   :  { %v1827_v17 = vadd.f32 %v1826_v49, %v1825_v10  ;;  %v1855_v62 = vrot.slane %v1854_v23, 4 }
 0x3f3   :  { %v1828_v20 = vrot.slane %v1827_v17, 2  ;;  %v1856_v45 = vadd.f32 %v1855_v62, %v1854_v23  ;;  %v1921_v23 = vld [vmem:[%s3345_s10] sm:$0x1]  ;;  %s2500_s10 = scalar_lea.vmem %s2036_s26, 16 }
 0x3f4   :  { %p2501_p2 = scmp.ne.s32.totalorder %s2036_s26, %s2500_s10  ;;  %p2506_p4 = scmp.lt.s32.totalorder %s2504_s27, %s2500_s10 }
 0x3f5   :  { %v1829_v13 = vadd.f32 %v1828_v20, %v1827_v17  ;;  %v1857_v11 = vrot.slane %v1856_v45, 2  ;;  %v1923_v17 = vstv %s3346_s11 }
 0x3f6   :  { %p2507_p5 = por %p2506_p4, %p2505_p3 }
 0x3f7   :  { %v1830_v42 = vrot.slane %v1829_v13, 1  ;;  %v1858_v33 = vadd.f32 %v1857_v11, %v1856_v45 }
 0x3f8   :  { %p2508_p6 = pnand %p2507_p5, %p2501_p2 }
 0x3f9   :  { %v1831_v15 = vadd.f32 %v1830_v42, %v1829_v13  ;;  %v1859_v34 = vrot.slane %v1858_v33, 1 }
 0x3fb   :  { %v1860_v46 = vadd.f32 %v1859_v34, %v1858_v33  ;;  %v1861_v6 = vmul.f32 0.015625, %v1831_v15 }
 0x3fd   :  { %v1862_v59 = vmul.f32 0.015625, %v1860_v46  ;;  %v1863_v29 = vmul.f32 %v1861_v6, %v1861_v6 }
 0x3ff   :  { %v1864_v26 = vsub.f32 %v1862_v59, %v1863_v29 }
 0x401   :  { %v1865_v18 = vmax.f32 %v1864_v26, 0.0 }
 0x403   :  { %v1866_v9 = vadd.f32 1e-05, %v1865_v18 }
 0x405   :  { %2450 = vrsqrt.f32 %v1866_v9 }
 0x40f   :  { %v2451_v12 = vpop.eup %2450 }
 0x410   :  { %v1868_v28 = vmul.f32 %v2451_v12, %v1808_v24 }
 0x412   :  { %v1869_v5 = vmul.f32 %v1868_v28, %v1861_v6  ;;  %v1874_v41 = vrot.slane %v1868_v28, %v2812_v1 }
 0x414   :  { %v1870_v54 = vsub.f32 %v1809_v2, %v1869_v5  ;;  %v1882_v31 = vmul.f32 %v2205_v53, %v1874_v41  ;;  %v1875_v16 = vmul.f32 %v3251_v35, %v1874_v41  ;;  %v1876_v57 = vmul.f32 %v3255_v52, %v1874_v41 }
 0x415   :  { %v1877_v21 = vmul.f32 %v3265_v7, %v1874_v41  ;;  %v1878_v48 = vmul.f32 %v3271_v8, %v1874_v41  ;;  %v1879_v19 = vmul.f32 %v2196_v43, %v1874_v41  ;;  %v1880_v22 = vmul.f32 %v2199_v36, %v1874_v41 }
 0x416   :  { %v1887_v61 = vrot.slane %v1870_v54, %v2812_v1  ;;  %v1881_v30 = vmul.f32 %v2202_v4, %v1874_v41 }
 0x418   :  { %v1896_v58 = vadd.f32 %v1887_v61, %v1882_v31  ;;  %v1889_v38 = vadd.f32 %v1887_v61, %v1875_v16  ;;  %v1890_v60 = vadd.f32 %v1887_v61, %v1876_v57  ;;  %v1891_v0 = vadd.f32 %v1887_v61, %v1877_v21 }
 0x419   :  { %v1892_v56 = vadd.f32 %v1887_v61, %v1878_v48  ;;  %v1893_v44 = vadd.f32 %v1887_v61, %v1879_v19  ;;  %v1894_v14 = vadd.f32 %v1887_v61, %v1880_v22  ;;  %v1895_v32 = vadd.f32 %v1887_v61, %v1881_v30 }
 0x41a   :  { %vm1904_vm2 = vcmp.ge.f32.partialorder %v1896_v58, 0.0  ;;  %v1912_v35 = vmul.f32 0.02, %v1896_v58  ;;  %vm1897_vm3 = vcmp.ge.f32.partialorder %v1889_v38, 0.0  ;;  %vm1898_vm4 = vcmp.ge.f32.partialorder %v1890_v60, 0.0 }
 0x41b   :  { %v1905_v52 = vmul.f32 0.02, %v1889_v38  ;;  %v1906_v7 = vmul.f32 0.02, %v1890_v60  ;;  %vm1899_vm5 = vcmp.ge.f32.partialorder %v1891_v0, 0.0  ;;  %vm1900_vm6 = vcmp.ge.f32.partialorder %v1892_v56, 0.0 }
 0x41c   :  { %v1920_v8 = vsel %vm1904_vm2, %v1896_v58, %v1912_v35  ;;  %v1907_v43 = vmul.f32 0.02, %v1891_v0  ;;  %v1908_v1 = vmul.f32 0.02, %v1892_v56  ;;  %vm1901_vm7 = vcmp.ge.f32.partialorder %v1893_v44, 0.0 }
 0x41d   :  { %v1913_v36 = vsel %vm1897_vm3, %v1889_v38, %v1905_v52  ;;  %v1914_v4 = vsel %vm1898_vm4, %v1890_v60, %v1906_v7  ;;  %vm1902_vm9 = vcmp.ge.f32.partialorder %v1894_v14, 0.0  ;;  %v1909_v50 = vmul.f32 0.02, %v1893_v44 }
 0x41e   :  { %v2235_v47 = vpack.c.bf16 %v1914_v4, %v1913_v36  ;;  %v1915_v27 = vsel %vm1899_vm5, %v1891_v0, %v1907_v43  ;;  %v1916_v53 = vsel %vm1900_vm6, %v1892_v56, %v1908_v1  ;;  %v1910_v55 = vmul.f32 0.02, %v1894_v14 }
 0x41f   :  { %v2239_v39 = vpack.c.bf16 %v1916_v53, %v1915_v27  ;;  %v1917_v25 = vsel %vm1901_vm7, %v1893_v44, %v1909_v50  ;;  %vm1903_vm10 = vcmp.ge.f32.partialorder %v1895_v32, 0.0  ;;  %v1911_v40 = vmul.f32 0.02, %v1895_v32 }
 0x420   :  { %2237 = vmatpush3.bf16.xpose.msk.msra.mxu1 %vm3301_vm8, %v2235_v47  ;;  %v1918_v51 = vsel %vm1902_vm9, %v1894_v14, %v1910_v55 }
 0x421   :  { %2238 = vmatprep.subr.bf16.mxu1 %v2536_v37  ;;  %v2243_v10 = vpack.c.bf16 %v1918_v51, %v1917_v25  ;;  %v1919_v3 = vsel %vm1903_vm10, %v1895_v32, %v1911_v40 }
 0x422   :  { %v2247_v49 = vpack.c.bf16 %v1920_v8, %v1919_v3 }
 0x428   :  { %2241 = vmatpush3.bf16.xpose.msk.msra.mxu1 %vm3301_vm8, %v2239_v39 }
 0x429   :  { %2242 = vmatprep.subr.bf16.mxu1 %v2536_v37 }
 0x430   :  { %2245 = vmatpush3.bf16.xpose.msk.msra.mxu1 %vm3301_vm8, %v2243_v10 }
 0x431   :  { %2246 = vmatprep.subr.bf16.mxu1 %v2536_v37 }
 0x438   :  { %2249 = vmatpush3.bf16.xpose.msk.msra.mxu1 %vm3301_vm8, %v2247_v49 }
 0x43f   :  { %2232 = vmatmul.mubr.msk.f32.vlgmr.msra.gmra.mrb[48].mxu1 %vm1810_vm1, %v1921_v23 }
 0x512   :  { %v2017_v62 = vpop.f32.mrb[48].mxu1 }
 0x513   :  { %v2018_v20 = vadd.f32 %v2017_v62, %v1923_v17  ;;  %v2233_v45 = vpop.f32.mrb[49].mxu1 }
 0x515   :  { %v2021_v13 = vsub.f32 0.0, %v2018_v20 }
 0x517   :  { %v2022_v11 = vmul.f32 1.442695, %v2021_v13 }
 0x519   :  { %2452 = vpow2.f32 %v2022_v11 }
 0x523   :  { %v2453_v37 = vpop.eup %2452 }
 0x524   :  { %v2024_v42 = vadd.f32 1.0, %v2453_v37 }
 0x526   :  { %2454 = vrcp.f32 %v2024_v42 }
 0x530   :  { %v2455_v33 = vpop.eup %2454 }
 0x531   :  { %2028 = vst.msk [vmem:[#allocation8] sm:$0x1] %vm2027_vm11, %v2455_v33 }
 0x532   :  { %2511 = shalt.err (!%p2508_p6)
}
 0x533   :  { %s2512_s1 = scalar_lea.hbm %s3347_s12, 16 }
 0x534   :  { %p2513_p7 = scmp.ne.s32.totalorder %s3347_s12, %s2512_s1  ;;  %p2516_p8 = scmp.lt.u32.totalorder %s2512_s1, %s3347_s12 }
 0x536   :  { %p2518_p9 = pnand %p2516_p8, %p2513_p7 }
 0x538   :  { %2521 = shalt.err (!%p2518_p9)
}
 0x539   :  { %2038 = dma.vmem_to_hbm [thread:$0]  %s2036_s26, 16, %s3347_s12, [#allocation5]  }
 0x53a   :  { %2526 = dma.done.wait [#allocation5], 16  }
 0x53b   :  { %2527 = vsyncadd [#allocation5], 4294967280 }
 0x53c   :  { %2042 = vsyncpa [#allocation4], 1 }
 0x53d   :  { %2043 = vsyncpa [#allocation7], 1 }
 0x53e   :  { %2044 = vsyncpa [#allocation5], 1 }

</bundles_post_ra>
